<compile_context>
chip_gen: v7x
topology: tpu7x:2x2x1
jax: 0.10.0
libtpu: 0.0.40
codegen_flags: <defaults>
</compile_context>

<pallas_src>
import math

import jax
import jax.numpy as jnp
from jax import lax
from jax.experimental import pallas as pl
from jax.experimental.pallas import tpu as pltpu


# ---------- kernel 1: fused conv1(1x1)+bn1+relu -> pad -> im2col -> conv2(3x3)+bn2+relu ----------
def _stage12_kernel(x_ref, w1_ref, s1_ref, b1_ref, w2_ref, s2_ref, b2_ref,
                    o_ref, pad_ref, col_ref):
    _, h, w, cin = x_ref.shape
    planes = w1_ref.shape[1]

    # Zero the padded h1 buffer once; only its border must stay zero — the interior is
    # fully overwritten every grid step.
    @pl.when(pl.program_id(0) == 0)
    def _():
        pad_ref[...] = jnp.zeros_like(pad_ref)

    # conv1 (1x1) + bn1 + relu — bf16 MXU operands, f32 accumulate, f32 epilogue.
    x2 = x_ref[0].reshape(h * w, cin).astype(jnp.bfloat16)
    h1 = jnp.dot(x2, w1_ref[...], preferred_element_type=jnp.float32)
    h1 = jnp.maximum(h1 * s1_ref[...] + b1_ref[...], 0.0)

    # 1-px zero pad entirely in VMEM (no full-resolution HBM pad round-trip).
    pad_ref[pl.ds(1, h), pl.ds(1, w), :] = h1.reshape(h, w, planes)

    # im2col: 9 shifted taps concatenated along K -> one wide-K matmul (K = 9*planes).
    for ky in range(3):
        for kx in range(3):
            idx = ky * 3 + kx
            patch = pad_ref[pl.ds(ky, h), pl.ds(kx, w), :]
            col_ref[:, pl.ds(idx * planes, planes)] = (
                patch.reshape(h * w, planes).astype(jnp.bfloat16))

    h2 = jnp.dot(col_ref[...], w2_ref[...], preferred_element_type=jnp.float32)
    h2 = jnp.maximum(h2 * s2_ref[...] + b2_ref[...], 0.0)
    o_ref[...] = h2.reshape(1, h, w, planes).astype(o_ref.dtype)


def conv1_conv2_fused(x, w1, s1, b1, w2r, s2, b2):
    n, h, w, cin = x.shape
    planes = w1.shape[1]
    flops = 2 * n * h * w * (cin * planes + 9 * planes * planes)
    bytes_accessed = int(x.size * 4 + n * h * w * planes * 4
                         + (w1.size + w2r.size) * 2
                         + (s1.size + b1.size + s2.size + b2.size) * 4)
    return pl.pallas_call(
        _stage12_kernel,
        out_shape=jax.ShapeDtypeStruct((n, h, w, planes), x.dtype),
        grid=(n,),
        in_specs=[
            pl.BlockSpec((1, h, w, cin), lambda i: (i, 0, 0, 0)),
            pl.BlockSpec((cin, planes), lambda i: (0, 0)),
            pl.BlockSpec((1, planes), lambda i: (0, 0)),
            pl.BlockSpec((1, planes), lambda i: (0, 0)),
            pl.BlockSpec((9 * planes, planes), lambda i: (0, 0)),
            pl.BlockSpec((1, planes), lambda i: (0, 0)),
            pl.BlockSpec((1, planes), lambda i: (0, 0)),
        ],
        out_specs=pl.BlockSpec((1, h, w, planes), lambda i: (i, 0, 0, 0)),
        scratch_shapes=[
            pltpu.VMEM((h + 2, w + 2, planes), jnp.float32),     # zero-padded h1
            pltpu.VMEM((h * w, 9 * planes), jnp.bfloat16),       # im2col matrix
        ],
        compiler_params=pltpu.CompilerParams(dimension_semantics=("parallel",)),
        cost_estimate=pl.CostEstimate(flops=flops, transcendentals=0,
                                      bytes_accessed=bytes_accessed),
    )(x, w1, s1, b1, w2r, s2, b2)


# ---------- kernel 2a (tail, downsample): avgpool(main) + conv3 + bn3,
# ----------                              avgpool(x) + 1x1 conv + bn, add, relu ----------
def _tail_downsample_kernel(o2_ref, x_ref, w3_ref, s3_ref, b3_ref,
                            wd_ref, sd_ref, bd_ref, o_ref):
    _, ho, s, wo, _, p = o2_ref.shape
    cin = x_ref.shape[-1]
    c4 = o_ref.shape[-1]
    inv = 1.0 / float(s * s)

    pooled = (o2_ref[0].sum(axis=3).sum(axis=1) * inv).reshape(ho * wo, p)
    main = jnp.dot(pooled.astype(jnp.bfloat16), w3_ref[...],
                   preferred_element_type=jnp.float32)
    main = main * s3_ref[...] + b3_ref[...]

    xpool = (x_ref[0].sum(axis=3).sum(axis=1) * inv).reshape(ho * wo, cin)
    iden = jnp.dot(xpool.astype(jnp.bfloat16), wd_ref[...],
                   preferred_element_type=jnp.float32)
    iden = iden * sd_ref[...] + bd_ref[...]

    y = jnp.maximum(main + iden, 0.0)
    o_ref[...] = y.reshape(1, ho, wo, c4).astype(o_ref.dtype)


def tail_downsample(o2r, xr, w3, s3, b3, wd, sd, bd):
    n, ho, s, wo, _, p = o2r.shape
    cin = xr.shape[-1]
    c4 = w3.shape[1]
    flops = 2 * n * ho * wo * (p * c4 + cin * c4)
    bytes_accessed = int((o2r.size + xr.size + n * ho * wo * c4) * 4
                         + (w3.size + wd.size) * 2
                         + (s3.size + b3.size + sd.size + bd.size) * 4)
    return pl.pallas_call(
        _tail_downsample_kernel,
        out_shape=jax.ShapeDtypeStruct((n, ho, wo, c4), o2r.dtype),
        grid=(n,),
        in_specs=[
            pl.BlockSpec((1, ho, s, wo, s, p), lambda i: (i, 0, 0, 0, 0, 0)),
            pl.BlockSpec((1, ho, s, wo, s, cin), lambda i: (i, 0, 0, 0, 0, 0)),
            pl.BlockSpec((p, c4), lambda i: (0, 0)),
            pl.BlockSpec((1, c4), lambda i: (0, 0)),
            pl.BlockSpec((1, c4), lambda i: (0, 0)),
            pl.BlockSpec((cin, c4), lambda i: (0, 0)),
            pl.BlockSpec((1, c4), lambda i: (0, 0)),
            pl.BlockSpec((1, c4), lambda i: (0, 0)),
        ],
        out_specs=pl.BlockSpec((1, ho, wo, c4), lambda i: (i, 0, 0, 0)),
        compiler_params=pltpu.CompilerParams(dimension_semantics=("parallel",)),
        cost_estimate=pl.CostEstimate(flops=flops, transcendentals=0,
                                      bytes_accessed=bytes_accessed),
    )(o2r, xr, w3, s3, b3, wd, sd, bd)


# ---------- kernel 2b (tail, no downsample): conv3 + bn3 + identity add + relu ----------
def _tail_identity_kernel(h2_ref, x_ref, w3_ref, s3_ref, b3_ref, o_ref):
    _, h, w, p = h2_ref.shape
    c4 = o_ref.shape[-1]
    hw = h * w
    main = jnp.dot(h2_ref[0].reshape(hw, p).astype(jnp.bfloat16), w3_ref[...],
                   preferred_element_type=jnp.float32)
    main = main * s3_ref[...] + b3_ref[...]
    y = jnp.maximum(main + x_ref[0].reshape(hw, c4), 0.0)
    o_ref[...] = y.reshape(1, h, w, c4).astype(o_ref.dtype)


def tail_identity(h2, x, w3, s3, b3):
    n, h, w, p = h2.shape
    c4 = w3.shape[1]
    flops = 2 * n * h * w * p * c4
    bytes_accessed = int((h2.size + x.size + n * h * w * c4) * 4
                         + w3.size * 2 + (s3.size + b3.size) * 4)
    return pl.pallas_call(
        _tail_identity_kernel,
        out_shape=jax.ShapeDtypeStruct((n, h, w, c4), h2.dtype),
        grid=(n,),
        in_specs=[
            pl.BlockSpec((1, h, w, p), lambda i: (i, 0, 0, 0)),
            pl.BlockSpec((1, h, w, c4), lambda i: (i, 0, 0, 0)),
            pl.BlockSpec((p, c4), lambda i: (0, 0)),
            pl.BlockSpec((1, c4), lambda i: (0, 0)),
            pl.BlockSpec((1, c4), lambda i: (0, 0)),
        ],
        out_specs=pl.BlockSpec((1, h, w, c4), lambda i: (i, 0, 0, 0)),
        compiler_params=pltpu.CompilerParams(dimension_semantics=("parallel",)),
        cost_estimate=pl.CostEstimate(flops=flops, transcendentals=0,
                                      bytes_accessed=bytes_accessed),
    )(h2, x, w3, s3, b3)


# ---------------- full Bottleneck forward (NCHW in / NCHW out) ----------------
def bottleneck_forward(x_nchw, p, stride, has_downsample):
    x = jnp.transpose(x_nchw, (0, 2, 3, 1))            # -> NHWC
    n, h, w, cin = x.shape
    planes = p["w1"].shape[1]
    c4 = p["w3"].shape[1]
    assert h % stride == 0 and w % stride == 0, "H/W must be divisible by stride"
    if not has_downsample:
        assert cin == c4, "identity path requires inplanes == planes * expansion"

    bf16 = jnp.bfloat16
    w1 = p["w1"].astype(bf16)                            # (Cin, planes)
    w2r = p["w2"].reshape(9 * planes, planes).astype(bf16)   # HWIO -> (9*planes, planes)
    w3 = p["w3"].astype(bf16)                            # (planes, c4)
    s1 = p["s1"].reshape(1, planes); b1 = p["b1"].reshape(1, planes)
    s2 = p["s2"].reshape(1, planes); b2 = p["b2"].reshape(1, planes)
    s3 = p["s3"].reshape(1, c4); b3 = p["b3"].reshape(1, c4)

    # stage 1+2 fused: conv1+bn1+relu -> (in-VMEM pad) -> conv2(3x3)+bn2+relu
    h2 = conv1_conv2_fused(x, w1, s1, b1, w2r, s2, b2)   # (n, h, w, planes) f32

    s = stride
    ho, wo = h // s, w // s
    if has_downsample:
        wd = p["wd"].astype(bf16)
        sd = p["sd"].reshape(1, c4); bd = p["bd"].reshape(1, c4)
        # reshape in HBM (free) so the kernel pools with cheap middle-axis sums
        o2r = h2.reshape(n, ho, s, wo, s, planes)
        xr = x.reshape(n, ho, s, wo, s, cin)
        out = tail_downsample(o2r, xr, w3, s3, b3, wd, sd, bd)
    else:
        out = tail_identity(h2, x, w3, s3, b3)
    return jnp.transpose(out, (0, 3, 1, 2))              # -> NCHW


# ---------------- deterministic parameter init ----------------
def init_params(key, inplanes, planes, expansion=4):
    c4 = planes * expansion
    ks = jax.random.split(key, 8)

    def conv_w(k, shape, fan_in):
        return jax.random.normal(k, shape, jnp.float32) / math.sqrt(fan_in)

    def bn_fold(k, c, eps=1e-5):
        kg, kb, km, kv = jax.random.split(k, 4)
        gamma = 1.0 + 0.1 * jax.random.normal(kg, (c,), jnp.float32)
        beta = 0.1 * jax.random.normal(kb, (c,), jnp.float32)
        rmean = 0.1 * jax.random.normal(km, (c,), jnp.float32)
        rvar = 1.0 + jax.random.uniform(kv, (c,), jnp.float32)
        scale = gamma / jnp.sqrt(rvar + eps)
        bias = beta - rmean * scale
        return scale, bias

    p = {}
    p["w1"] = conv_w(ks[0], (inplanes, planes), inplanes)        # 1x1 conv as (Cin, Cout)
    p["s1"], p["b1"] = bn_fold(ks[1], planes)
    p["w2"] = conv_w(ks[2], (3, 3, planes, planes), 9 * planes)  # HWIO
    p["s2"], p["b2"] = bn_fold(ks[3], planes)
    p["w3"] = conv_w(ks[4], (planes, c4), planes)
    p["s3"], p["b3"] = bn_fold(ks[5], c4)
    p["wd"] = conv_w(ks[6], (inplanes, c4), inplanes)            # downsample 1x1 conv
    p["sd"], p["bd"] = bn_fold(ks[7], c4)
    return p


# ---------------- pure-JAX f32 reference (same folded-BN semantics) ----------------
def ref_bottleneck(x_nhwc, p, stride, has_downsample):
    def pool(y, s):
        if s == 1:
            return y
        n, h, w, c = y.shape
        return y.reshape(n, h // s, s, w // s, s, c).mean(axis=(2, 4))

    h = jnp.einsum("nhwc,cd->nhwd", x_nhwc, p["w1"])
    h = jax.nn.relu(h * p["s1"] + p["b1"])
    h = lax.conv_general_dilated(h, p["w2"], (1, 1), ((1, 1), (1, 1)),
                                 dimension_numbers=("NHWC", "HWIO", "NHWC"))
    h = jax.nn.relu(h * p["s2"] + p["b2"])
    h = pool(h, stride)
    main = jnp.einsum("nhwc,cd->nhwd", h, p["w3"]) * p["s3"] + p["b3"]
    ident = x_nhwc
    if has_downsample:
        ident = pool(ident, stride)
        ident = jnp.einsum("nhwc,cd->nhwd", ident, p["wd"]) * p["sd"] + p["bd"]
    return jax.nn.relu(main + ident)


def _run_case(key, n, inplanes, planes, stride, h, w):
    has_downsample = stride > 1 or inplanes != planes * 4
    kx, kp = jax.random.split(key)
    x = jax.random.normal(kx, (n, inplanes, h, w), jnp.float32)   # NCHW, like PyTorch
    params = init_params(kp, inplanes, planes)

    out = bottleneck_forward(x, params, stride, has_downsample)
    out = jax.block_until_ready(out)

    ref = ref_bottleneck(jnp.transpose(x, (0, 2, 3, 1)), params, stride, has_downsample)
    ref = jnp.transpose(ref, (0, 3, 1, 2))

    assert out.shape == (n, planes * 4, h // stride, w // stride), out.shape
    err = float(jnp.max(jnp.abs(out - ref)))
    # bf16 MXU operands (f32 accumulate) vs pure-f32 reference -> allow ~1% relative error.
    tol = 5e-2 * (float(jnp.max(jnp.abs(ref))) + 1.0)
    assert err < tol, f"max abs err {err} (tol {tol})"


if __name__ == "__main__":
    key = jax.random.PRNGKey(0)
    k1, k2 = jax.random.split(key)
    # downsample path (stride 2)
    _run_case(k1, n=2, inplanes=8, planes=4, stride=2, h=16, w=16)
    # identity path (stride 1, inplanes == planes * 4) -> no eye-matmul, direct add
    _run_case(k2, n=2, inplanes=16, planes=4, stride=1, h=16, w=16)
    print("KERNEL_OK")
</pallas_src>

<mosaic_0001>
module attributes {stable_mosaic.version = 11 : i64} {
  func.func @_stage12_kernel(%arg0: i32, %arg1: memref<1x16x16x8xf32, #tpu.memory_space<vmem>>, %arg2: memref<8x4xbf16, #tpu.memory_space<vmem>>, %arg3: memref<1x4xf32, #tpu.memory_space<vmem>>, %arg4: memref<1x4xf32, #tpu.memory_space<vmem>>, %arg5: memref<36x4xbf16, #tpu.memory_space<vmem>>, %arg6: memref<1x4xf32, #tpu.memory_space<vmem>>, %arg7: memref<1x4xf32, #tpu.memory_space<vmem>>, %arg8: memref<1x16x16x4xf32, #tpu.memory_space<vmem>>, %arg9: memref<18x18x4xf32, #tpu.memory_space<vmem>>, %arg10: memref<256x36xbf16, #tpu.memory_space<vmem>>) attributes {dimension_semantics = [#tpu.dimension_semantics<parallel>], iteration_bounds = array<i64: 2>, scalar_prefetch = 0 : i64, scratch_operands = 2 : i64, tpu.core_type = #tpu.core_type<tc>, window_params = [{transform_indices = @transform_0, window_bounds = array<i64: 1, 16, 16, 8>}, {pipeline_mode = #tpu.pipeline_mode<synchronous>, transform_indices = @transform_1, window_bounds = array<i64: 8, 4>}, {pipeline_mode = #tpu.pipeline_mode<synchronous>, transform_indices = @transform_2, window_bounds = array<i64: 1, 4>}, {pipeline_mode = #tpu.pipeline_mode<synchronous>, transform_indices = @transform_3, window_bounds = array<i64: 1, 4>}, {pipeline_mode = #tpu.pipeline_mode<synchronous>, transform_indices = @transform_4, window_bounds = array<i64: 36, 4>}, {pipeline_mode = #tpu.pipeline_mode<synchronous>, transform_indices = @transform_5, window_bounds = array<i64: 1, 4>}, {pipeline_mode = #tpu.pipeline_mode<synchronous>, transform_indices = @transform_6, window_bounds = array<i64: 1, 4>}, {transform_indices = @transform_7, window_bounds = array<i64: 1, 16, 16, 4>}]} {
    %c0_i32 = arith.constant 0 : i32
    %0 = arith.cmpi eq, %arg0, %c0_i32 : i32
    %1 = arith.extui %0 : i1 to i32
    %c0_i32_0 = arith.constant 0 : i32
    %2 = arith.cmpi ne, %1, %c0_i32_0 : i32
    scf.if %2 {
      %cst_63 = arith.constant 0.000000e+00 : f32
      %68 = vector.broadcast %cst_63 : f32 to vector<18x18x4xf32>
      %c0_64 = arith.constant 0 : index
      %c0_65 = arith.constant 0 : index
      %c0_66 = arith.constant 0 : index
      %69 = vector.load %arg9[%c0_64, %c0_65, %c0_66] : memref<18x18x4xf32, #tpu.memory_space<vmem>>, vector<18x18x4xf32>
      tpu.vector_store %arg9[%c0_64, %c0_65, %c0_66], %68 {strides = array<i32>} : memref<18x18x4xf32, #tpu.memory_space<vmem>>, vector<18x18x4xf32>,
    } else {
    }
    %c0 = arith.constant 0 : index
    %c0_1 = arith.constant 0 : index
    %c0_2 = arith.constant 0 : index
    %c0_3 = arith.constant 0 : index
    %3 = vector.load %arg1[%c0, %c0_1, %c0_2, %c0_3] : memref<1x16x16x8xf32, #tpu.memory_space<vmem>>, vector<1x16x16x8xf32>
    %4 = vector.shape_cast %3 : vector<1x16x16x8xf32> to vector<16x16x8xf32>
    %5 = vector.shape_cast %4 : vector<16x16x8xf32> to vector<256x8xf32>
    %6 = arith.truncf %5 : vector<256x8xf32> to vector<256x8xbf16>
    %c0_4 = arith.constant 0 : index
    %c0_5 = arith.constant 0 : index
    %7 = vector.load %arg2[%c0_4, %c0_5] : memref<8x4xbf16, #tpu.memory_space<vmem>>, vector<8x4xbf16>
    %cst = arith.constant dense<0.000000e+00> : vector<256x4xf32>
    %8 = tpu.matmul %6, %7, %cst {dimension_numbers = #tpu.dot_dimension_numbers<[1], [0], [0], [1], [0, 0, 1, 1], [], []>} : vector<256x8xbf16>, vector<8x4xbf16>, vector<256x4xf32> -> vector<256x4xf32>
    %c0_6 = arith.constant 0 : index
    %c0_7 = arith.constant 0 : index
    %9 = vector.load %arg3[%c0_6, %c0_7] : memref<1x4xf32, #tpu.memory_space<vmem>>, vector<1x4xf32>
    %10 = vector.broadcast %9 : vector<1x4xf32> to vector<256x4xf32>
    %11 = arith.mulf %8, %10 : vector<256x4xf32>
    %c0_8 = arith.constant 0 : index
    %c0_9 = arith.constant 0 : index
    %12 = vector.load %arg4[%c0_8, %c0_9] : memref<1x4xf32, #tpu.memory_space<vmem>>, vector<1x4xf32>
    %13 = vector.broadcast %12 : vector<1x4xf32> to vector<256x4xf32>
    %14 = arith.addf %11, %13 : vector<256x4xf32>
    %cst_10 = arith.constant 0.000000e+00 : f32
    %15 = vector.broadcast %cst_10 : f32 to vector<256x4xf32>
    %16 = arith.maximumf %14, %15 : vector<256x4xf32>
    %17 = vector.shape_cast %16 : vector<256x4xf32> to vector<16x16x4xf32>
    %c1 = arith.constant 1 : index
    %c1_11 = arith.constant 1 : index
    %c0_12 = arith.constant 0 : index
    %18 = vector.load %arg9[%c1, %c1_11, %c0_12] : memref<18x18x4xf32, #tpu.memory_space<vmem>>, vector<16x16x4xf32>
    tpu.vector_store %arg9[%c1, %c1_11, %c0_12], %17 {strides = array<i32>} : memref<18x18x4xf32, #tpu.memory_space<vmem>>, vector<16x16x4xf32>,
    %c0_13 = arith.constant 0 : index
    %c0_14 = arith.constant 0 : index
    %c0_15 = arith.constant 0 : index
    %19 = vector.load %arg9[%c0_13, %c0_14, %c0_15] : memref<18x18x4xf32, #tpu.memory_space<vmem>>, vector<16x16x4xf32>
    %20 = vector.shape_cast %19 : vector<16x16x4xf32> to vector<256x4xf32>
    %21 = arith.truncf %20 : vector<256x4xf32> to vector<256x4xbf16>
    %c0_16 = arith.constant 0 : index
    %c0_17 = arith.constant 0 : index
    %22 = vector.load %arg10[%c0_16, %c0_17] : memref<256x36xbf16, #tpu.memory_space<vmem>>, vector<256x4xbf16>
    tpu.vector_store %arg10[%c0_16, %c0_17], %21 {strides = array<i32>} : memref<256x36xbf16, #tpu.memory_space<vmem>>, vector<256x4xbf16>,
    %c0_18 = arith.constant 0 : index
    %c1_19 = arith.constant 1 : index
    %c0_20 = arith.constant 0 : index
    %23 = vector.load %arg9[%c0_18, %c1_19, %c0_20] : memref<18x18x4xf32, #tpu.memory_space<vmem>>, vector<16x16x4xf32>
    %24 = vector.shape_cast %23 : vector<16x16x4xf32> to vector<256x4xf32>
    %25 = arith.truncf %24 : vector<256x4xf32> to vector<256x4xbf16>
    %c0_21 = arith.constant 0 : index
    %c4 = arith.constant 4 : index
    %26 = vector.load %arg10[%c0_21, %c4] : memref<256x36xbf16, #tpu.memory_space<vmem>>, vector<256x4xbf16>
    tpu.vector_store %arg10[%c0_21, %c4], %25 {strides = array<i32>} : memref<256x36xbf16, #tpu.memory_space<vmem>>, vector<256x4xbf16>,
    %c0_22 = arith.constant 0 : index
    %c2 = arith.constant 2 : index
    %c0_23 = arith.constant 0 : index
    %27 = vector.load %arg9[%c0_22, %c2, %c0_23] : memref<18x18x4xf32, #tpu.memory_space<vmem>>, vector<16x16x4xf32>
    %28 = vector.shape_cast %27 : vector<16x16x4xf32> to vector<256x4xf32>
    %29 = arith.truncf %28 : vector<256x4xf32> to vector<256x4xbf16>
    %c0_24 = arith.constant 0 : index
    %c8 = arith.constant 8 : index
    %30 = vector.load %arg10[%c0_24, %c8] : memref<256x36xbf16, #tpu.memory_space<vmem>>, vector<256x4xbf16>
    tpu.vector_store %arg10[%c0_24, %c8], %29 {strides = array<i32>} : memref<256x36xbf16, #tpu.memory_space<vmem>>, vector<256x4xbf16>,
    %c1_25 = arith.constant 1 : index
    %c0_26 = arith.constant 0 : index
    %c0_27 = arith.constant 0 : index
    %31 = vector.load %arg9[%c1_25, %c0_26, %c0_27] : memref<18x18x4xf32, #tpu.memory_space<vmem>>, vector<16x16x4xf32>
    %32 = vector.shape_cast %31 : vector<16x16x4xf32> to vector<256x4xf32>
    %33 = arith.truncf %32 : vector<256x4xf32> to vector<256x4xbf16>
    %c0_28 = arith.constant 0 : index
    %c12 = arith.constant 12 : index
    %34 = vector.load %arg10[%c0_28, %c12] : memref<256x36xbf16, #tpu.memory_space<vmem>>, vector<256x4xbf16>
    tpu.vector_store %arg10[%c0_28, %c12], %33 {strides = array<i32>} : memref<256x36xbf16, #tpu.memory_space<vmem>>, vector<256x4xbf16>,
    %c1_29 = arith.constant 1 : index
    %c1_30 = arith.constant 1 : index
    %c0_31 = arith.constant 0 : index
    %35 = vector.load %arg9[%c1_29, %c1_30, %c0_31] : memref<18x18x4xf32, #tpu.memory_space<vmem>>, vector<16x16x4xf32>
    %36 = vector.shape_cast %35 : vector<16x16x4xf32> to vector<256x4xf32>
    %37 = arith.truncf %36 : vector<256x4xf32> to vector<256x4xbf16>
    %c0_32 = arith.constant 0 : index
    %c16 = arith.constant 16 : index
    %38 = vector.load %arg10[%c0_32, %c16] : memref<256x36xbf16, #tpu.memory_space<vmem>>, vector<256x4xbf16>
    tpu.vector_store %arg10[%c0_32, %c16], %37 {strides = array<i32>} : memref<256x36xbf16, #tpu.memory_space<vmem>>, vector<256x4xbf16>,
    %c1_33 = arith.constant 1 : index
    %c2_34 = arith.constant 2 : index
    %c0_35 = arith.constant 0 : index
    %39 = vector.load %arg9[%c1_33, %c2_34, %c0_35] : memref<18x18x4xf32, #tpu.memory_space<vmem>>, vector<16x16x4xf32>
    %40 = vector.shape_cast %39 : vector<16x16x4xf32> to vector<256x4xf32>
    %41 = arith.truncf %40 : vector<256x4xf32> to vector<256x4xbf16>
    %c0_36 = arith.constant 0 : index
    %c20 = arith.constant 20 : index
    %42 = vector.load %arg10[%c0_36, %c20] : memref<256x36xbf16, #tpu.memory_space<vmem>>, vector<256x4xbf16>
    tpu.vector_store %arg10[%c0_36, %c20], %41 {strides = array<i32>} : memref<256x36xbf16, #tpu.memory_space<vmem>>, vector<256x4xbf16>,
    %c2_37 = arith.constant 2 : index
    %c0_38 = arith.constant 0 : index
    %c0_39 = arith.constant 0 : index
    %43 = vector.load %arg9[%c2_37, %c0_38, %c0_39] : memref<18x18x4xf32, #tpu.memory_space<vmem>>, vector<16x16x4xf32>
    %44 = vector.shape_cast %43 : vector<16x16x4xf32> to vector<256x4xf32>
    %45 = arith.truncf %44 : vector<256x4xf32> to vector<256x4xbf16>
    %c0_40 = arith.constant 0 : index
    %c24 = arith.constant 24 : index
    %46 = vector.load %arg10[%c0_40, %c24] : memref<256x36xbf16, #tpu.memory_space<vmem>>, vector<256x4xbf16>
    tpu.vector_store %arg10[%c0_40, %c24], %45 {strides = array<i32>} : memref<256x36xbf16, #tpu.memory_space<vmem>>, vector<256x4xbf16>,
    %c2_41 = arith.constant 2 : index
    %c1_42 = arith.constant 1 : index
    %c0_43 = arith.constant 0 : index
    %47 = vector.load %arg9[%c2_41, %c1_42, %c0_43] : memref<18x18x4xf32, #tpu.memory_space<vmem>>, vector<16x16x4xf32>
    %48 = vector.shape_cast %47 : vector<16x16x4xf32> to vector<256x4xf32>
    %49 = arith.truncf %48 : vector<256x4xf32> to vector<256x4xbf16>
    %c0_44 = arith.constant 0 : index
    %c28 = arith.constant 28 : index
    %50 = vector.load %arg10[%c0_44, %c28] : memref<256x36xbf16, #tpu.memory_space<vmem>>, vector<256x4xbf16>
    tpu.vector_store %arg10[%c0_44, %c28], %49 {strides = array<i32>} : memref<256x36xbf16, #tpu.memory_space<vmem>>, vector<256x4xbf16>,
    %c2_45 = arith.constant 2 : index
    %c2_46 = arith.constant 2 : index
    %c0_47 = arith.constant 0 : index
    %51 = vector.load %arg9[%c2_45, %c2_46, %c0_47] : memref<18x18x4xf32, #tpu.memory_space<vmem>>, vector<16x16x4xf32>
    %52 = vector.shape_cast %51 : vector<16x16x4xf32> to vector<256x4xf32>
    %53 = arith.truncf %52 : vector<256x4xf32> to vector<256x4xbf16>
    %c0_48 = arith.constant 0 : index
    %c32 = arith.constant 32 : index
    %54 = vector.load %arg10[%c0_48, %c32] : memref<256x36xbf16, #tpu.memory_space<vmem>>, vector<256x4xbf16>
    tpu.vector_store %arg10[%c0_48, %c32], %53 {strides = array<i32>} : memref<256x36xbf16, #tpu.memory_space<vmem>>, vector<256x4xbf16>,
    %c0_49 = arith.constant 0 : index
    %c0_50 = arith.constant 0 : index
    %55 = vector.load %arg10[%c0_49, %c0_50] : memref<256x36xbf16, #tpu.memory_space<vmem>>, vector<256x36xbf16>
    %c0_51 = arith.constant 0 : index
    %c0_52 = arith.constant 0 : index
    %56 = vector.load %arg5[%c0_51, %c0_52] : memref<36x4xbf16, #tpu.memory_space<vmem>>, vector<36x4xbf16>
    %cst_53 = arith.constant dense<0.000000e+00> : vector<256x4xf32>
    %57 = tpu.matmul %55, %56, %cst_53 {dimension_numbers = #tpu.dot_dimension_numbers<[1], [0], [0], [1], [0, 0, 1, 1], [], []>} : vector<256x36xbf16>, vector<36x4xbf16>, vector<256x4xf32> -> vector<256x4xf32>
    %c0_54 = arith.constant 0 : index
    %c0_55 = arith.constant 0 : index
    %58 = vector.load %arg6[%c0_54, %c0_55] : memref<1x4xf32, #tpu.memory_space<vmem>>, vector<1x4xf32>
    %59 = vector.broadcast %58 : vector<1x4xf32> to vector<256x4xf32>
    %60 = arith.mulf %57, %59 : vector<256x4xf32>
    %c0_56 = arith.constant 0 : index
    %c0_57 = arith.constant 0 : index
    %61 = vector.load %arg7[%c0_56, %c0_57] : memref<1x4xf32, #tpu.memory_space<vmem>>, vector<1x4xf32>
    %62 = vector.broadcast %61 : vector<1x4xf32> to vector<256x4xf32>
    %63 = arith.addf %60, %62 : vector<256x4xf32>
    %cst_58 = arith.constant 0.000000e+00 : f32
    %64 = vector.broadcast %cst_58 : f32 to vector<256x4xf32>
    %65 = arith.maximumf %63, %64 : vector<256x4xf32>
    %66 = vector.shape_cast %65 : vector<256x4xf32> to vector<1x16x16x4xf32>
    %c0_59 = arith.constant 0 : index
    %c0_60 = arith.constant 0 : index
    %c0_61 = arith.constant 0 : index
    %c0_62 = arith.constant 0 : index
    %67 = vector.load %arg8[%c0_59, %c0_60, %c0_61, %c0_62] : memref<1x16x16x4xf32, #tpu.memory_space<vmem>>, vector<1x16x16x4xf32>
    tpu.vector_store %arg8[%c0_59, %c0_60, %c0_61, %c0_62], %66 {strides = array<i32>} : memref<1x16x16x4xf32, #tpu.memory_space<vmem>>, vector<1x16x16x4xf32>,
    return
  }
  func.func @transform_0(%arg0: i32) -> (i32, i32, i32, i32) {
    %c0_i32 = arith.constant 0 : i32
    %c0_i32_0 = arith.constant 0 : i32
    %c0_i32_1 = arith.constant 0 : i32
    %c0_i32_2 = arith.constant 0 : i32
    return %arg0, %c0_i32, %c0_i32_0, %c0_i32_1 : i32, i32, i32, i32
  }
  func.func @transform_1(%arg0: i32) -> (i32, i32) {
    %c0_i32 = arith.constant 0 : i32
    %c0_i32_0 = arith.constant 0 : i32
    %c0_i32_1 = arith.constant 0 : i32
    return %c0_i32, %c0_i32_0 : i32, i32
  }
  func.func @transform_2(%arg0: i32) -> (i32, i32) {
    %c0_i32 = arith.constant 0 : i32
    %c0_i32_0 = arith.constant 0 : i32
    %c0_i32_1 = arith.constant 0 : i32
    return %c0_i32, %c0_i32_0 : i32, i32
  }
  func.func @transform_3(%arg0: i32) -> (i32, i32) {
    %c0_i32 = arith.constant 0 : i32
    %c0_i32_0 = arith.constant 0 : i32
    %c0_i32_1 = arith.constant 0 : i32
    return %c0_i32, %c0_i32_0 : i32, i32
  }
  func.func @transform_4(%arg0: i32) -> (i32, i32) {
    %c0_i32 = arith.constant 0 : i32
    %c0_i32_0 = arith.constant 0 : i32
    %c0_i32_1 = arith.constant 0 : i32
    return %c0_i32, %c0_i32_0 : i32, i32
  }
  func.func @transform_5(%arg0: i32) -> (i32, i32) {
    %c0_i32 = arith.constant 0 : i32
    %c0_i32_0 = arith.constant 0 : i32
    %c0_i32_1 = arith.constant 0 : i32
    return %c0_i32, %c0_i32_0 : i32, i32
  }
  func.func @transform_6(%arg0: i32) -> (i32, i32) {
    %c0_i32 = arith.constant 0 : i32
    %c0_i32_0 = arith.constant 0 : i32
    %c0_i32_1 = arith.constant 0 : i32
    return %c0_i32, %c0_i32_0 : i32, i32
  }
  func.func @transform_7(%arg0: i32) -> (i32, i32, i32, i32) {
    %c0_i32 = arith.constant 0 : i32
    %c0_i32_0 = arith.constant 0 : i32
    %c0_i32_1 = arith.constant 0 : i32
    %c0_i32_2 = arith.constant 0 : i32
    return %arg0, %c0_i32, %c0_i32_0, %c0_i32_1 : i32, i32, i32, i32
  }
}

</mosaic_0001>

<bundles_post_ra>
// kernel: tpu_custom_call.1
= control target key start
LH: loop header
LB: loop body
LE: loop exit
PB: predicated region body
PF: predicated region fallthrough
CT: control target
= control target key end

     0   :  { %s2531_s24 = smov 0   ;;  %s3282_s0 = inlined_call_operand.vmem [shape: f32[2,16,16,8], index: 0, kind: input, shape index: {}]   ;;  %s3283_s1 = inlined_call_operand.vmem [shape: bf16[8,4], index: 1, kind: input, shape index: {}]   ;;  %s3284_s2 = inlined_call_operand.vmem [shape: f32[1,4], index: 2, kind: input, shape index: {}]   ;;  %s3285_s3 = inlined_call_operand.vmem [shape: f32[1,4], index: 3, kind: input, shape index: {}]   ;;  %s3286_s4 = inlined_call_operand.vmem [shape: bf16[36,4], index: 4, kind: input, shape index: {}]   ;;  %s3287_s5 = inlined_call_operand.vmem [shape: f32[1,4], index: 5, kind: input, shape index: {}]   ;;  %s3288_s6 = inlined_call_operand.vmem [shape: f32[1,4], index: 6, kind: input, shape index: {}]   ;;  %s3289_s7 = inlined_call_operand.vmem [shape: f32[2,16,16,4], index: 7, kind: output, shape index: {}]  }
   0x1 LB: > { %s2291_s25 = sadd.s32 4294967295, %s2480_s24   ;;  %p2295_p0 = scmp.ge.s32.totalorder %s2480_s24, 1  ;;  %s2480_s24 = sphi %s2531_s24, %s17_s24  }
   0x2   : > { %p237_p1 = scmp.lt.s32.totalorder %s2480_s24, 3 }
   0x4   : > { %p238_p2 = pnand %p2295_p0, %p237_p1 }
   0x5   : > { %p269_p3 = scmp.lt.s32.totalorder (!%p238_p2), %s2291_s25, 1  ;;  %p2300_p4 = scmp.ne.s32.totalorder (!%p238_p2), %s2291_s25, 0 }
   0x6   : > { %241 = sbr.rel (%p238_p2) target bundleno = 871 (0x367), region = 48 }
   0xd   : > { %s270_s26 = scalar_select %p269_p3, %s2291_s25, 1 }
   0xe   : > { %283 = sbr.rel (%p2300_p4) target bundleno = 42 (0x2a), region = 52  ;;  %vm284_vm0 = vcmask (!%p2300_p4), 31744   ;;  %vm287_vm1 = vcmask (!%p2300_p4), 25600   ;;  %v2482_v0 = vmov (!%p2300_p4), 0.0  }
   0xf   : > { %s2342_s27 = sshll.u32 %s270_s26, 8  ;;  %285 = vst.msk [vmem:[#allocation2] sm:$0xff] (!%p2300_p4), %vm284_vm0, %v2482_v0  ;;  %286 = vst.msk [vmem:[#allocation2 + $0x8] sm:$0xff] (!%p2300_p4), %vm284_vm0, %v2482_v0 }
  0x10   : > { %s2542_s30 = scalar_lea.vmem %s3282_s0, %s2342_s27  ;;  %s2547_s10 = scalar_lea.vmem %s3289_s7, %s2342_s27  ;;  %289 = vst.msk [vmem:[#allocation2 + $0x18] sm:$0xff] (!%p2300_p4), %vm284_vm0, %v2482_v0  ;;  %290 = vst.msk [vmem:[#allocation2 + $0x20] sm:$0xff] (!%p2300_p4), %vm284_vm0, %v2482_v0 }
  0x11   : > { %292 = vst.msk [vmem:[#allocation2 + $0x30] sm:$0xff] (!%p2300_p4), %vm284_vm0, %v2482_v0  ;;  %293 = vst.msk [vmem:[#allocation2 + $0x38] sm:$0xff] (!%p2300_p4), %vm284_vm0, %v2482_v0 }
  0x12   : > { %295 = vst.msk [vmem:[#allocation2 + $0x48] sm:$0xff] (!%p2300_p4), %vm284_vm0, %v2482_v0  ;;  %296 = vst.msk [vmem:[#allocation2 + $0x50] sm:$0xff] (!%p2300_p4), %vm284_vm0, %v2482_v0 }
  0x13   : > { %298 = vst.msk [vmem:[#allocation2 + $0x60] sm:$0xff] (!%p2300_p4), %vm284_vm0, %v2482_v0  ;;  %299 = vst.msk [vmem:[#allocation2 + $0x68] sm:$0xff] (!%p2300_p4), %vm284_vm0, %v2482_v0 }
  0x14   : > { %301 = vst.msk [vmem:[#allocation2 + $0x78] sm:$0xff] (!%p2300_p4), %vm284_vm0, %v2482_v0  ;;  %302 = vst.msk [vmem:[#allocation2 + $0x80] sm:$0xff] (!%p2300_p4), %vm284_vm0, %v2482_v0 }
  0x15   : > { %304 = vst.msk [vmem:[#allocation2 + $0x90] sm:$0xff] %vm284_vm0, %v2482_v0  ;;  %305 = vst.msk [vmem:[#allocation2 + $0x98] sm:$0xff] %vm284_vm0, %v2482_v0 }
  0x16   : > { %307 = vst.msk [vmem:[#allocation2 + $0xa8] sm:$0xff] %vm284_vm0, %v2482_v0  ;;  %308 = vst.msk [vmem:[#allocation2 + $0xb0] sm:$0xff] %vm284_vm0, %v2482_v0 }
  0x17   : > { %310 = vst.msk [vmem:[#allocation2 + $0xc0] sm:$0xff] %vm284_vm0, %v2482_v0  ;;  %311 = vst.msk [vmem:[#allocation2 + $0xc8] sm:$0xff] %vm284_vm0, %v2482_v0 }
  0x18   : > { %313 = vst.msk [vmem:[#allocation2 + $0xd8] sm:$0xff] %vm284_vm0, %v2482_v0  ;;  %314 = vst.msk [vmem:[#allocation2 + $0xe0] sm:$0xff] %vm284_vm0, %v2482_v0 }
  0x19   : > { %316 = vst.msk [vmem:[#allocation2 + $0xf0] sm:$0xff] %vm284_vm0, %v2482_v0  ;;  %317 = vst.msk [vmem:[#allocation2 + $0xf8] sm:$0xff] %vm284_vm0, %v2482_v0 }
  0x1a   : > { %319 = vst.msk [vmem:[#allocation2 + $0x108] sm:$0xff] %vm284_vm0, %v2482_v0  ;;  %320 = vst.msk [vmem:[#allocation2 + $0x110] sm:$0xff] %vm284_vm0, %v2482_v0 }
  0x1b   : > { %322 = vst.msk [vmem:[#allocation2 + $0x120] sm:$0xff] %vm284_vm0, %v2482_v0  ;;  %323 = vst.msk [vmem:[#allocation2 + $0x128] sm:$0xff] %vm284_vm0, %v2482_v0 }
  0x1c   : > { %325 = vst.msk [vmem:[#allocation2 + $0x138] sm:$0xff] %vm284_vm0, %v2482_v0  ;;  %326 = vst.msk [vmem:[#allocation2 + $0x140] sm:$0xff] %vm284_vm0, %v2482_v0 }
  0x1d   : > { %328 = vst.msk [vmem:[#allocation2 + $0x150] sm:$0xff] %vm284_vm0, %v2482_v0  ;;  %329 = vst.msk [vmem:[#allocation2 + $0x158] sm:$0xff] %vm284_vm0, %v2482_v0 }
  0x1e   : > { %331 = vst.msk [vmem:[#allocation2 + $0x168] sm:$0xff] %vm284_vm0, %v2482_v0  ;;  %332 = vst.msk [vmem:[#allocation2 + $0x170] sm:$0xff] %vm284_vm0, %v2482_v0 }
  0x1f   : > { %334 = vst.msk [vmem:[#allocation2 + $0x180] sm:$0xff] %vm284_vm0, %v2482_v0  ;;  %335 = vst.msk [vmem:[#allocation2 + $0x188] sm:$0xff] %vm284_vm0, %v2482_v0 }
  0x20   : > { %337 = vst.msk [vmem:[#allocation2 + $0x198] sm:$0xff] %vm284_vm0, %v2482_v0  ;;  %338 = vst.msk [vmem:[#allocation2 + $0x1a0] sm:$0xff] %vm284_vm0, %v2482_v0 }
  0x21   : > { %288 = vst.msk [vmem:[#allocation2 + $0x10] sm:$0x3] %vm287_vm1, %v2482_v0  ;;  %291 = vst.msk [vmem:[#allocation2 + $0x28] sm:$0x3] %vm287_vm1, %v2482_v0 }
  0x22   : > { %294 = vst.msk [vmem:[#allocation2 + $0x40] sm:$0x3] %vm287_vm1, %v2482_v0  ;;  %297 = vst.msk [vmem:[#allocation2 + $0x58] sm:$0x3] %vm287_vm1, %v2482_v0 }
  0x23   : > { %300 = vst.msk [vmem:[#allocation2 + $0x70] sm:$0x3] %vm287_vm1, %v2482_v0  ;;  %303 = vst.msk [vmem:[#allocation2 + $0x88] sm:$0x3] %vm287_vm1, %v2482_v0 }
  0x24   : > { %306 = vst.msk [vmem:[#allocation2 + $0xa0] sm:$0x3] %vm287_vm1, %v2482_v0  ;;  %309 = vst.msk [vmem:[#allocation2 + $0xb8] sm:$0x3] %vm287_vm1, %v2482_v0 }
  0x25   : > { %312 = vst.msk [vmem:[#allocation2 + $0xd0] sm:$0x3] %vm287_vm1, %v2482_v0  ;;  %315 = vst.msk [vmem:[#allocation2 + $0xe8] sm:$0x3] %vm287_vm1, %v2482_v0 }
  0x26   : > { %318 = vst.msk [vmem:[#allocation2 + $0x100] sm:$0x3] %vm287_vm1, %v2482_v0  ;;  %321 = vst.msk [vmem:[#allocation2 + $0x118] sm:$0x3] %vm287_vm1, %v2482_v0 }
  0x27   : > { %324 = vst.msk [vmem:[#allocation2 + $0x130] sm:$0x3] %vm287_vm1, %v2482_v0  ;;  %327 = vst.msk [vmem:[#allocation2 + $0x148] sm:$0x3] %vm287_vm1, %v2482_v0 }
  0x28   : > { %330 = vst.msk [vmem:[#allocation2 + $0x160] sm:$0x3] %vm287_vm1, %v2482_v0  ;;  %333 = vst.msk [vmem:[#allocation2 + $0x178] sm:$0x3] %vm287_vm1, %v2482_v0 }
  0x29   : > { %336 = vst.msk [vmem:[#allocation2 + $0x190] sm:$0x3] %vm287_vm1, %v2482_v0  ;;  %339 = vst.msk [vmem:[#allocation2 + $0x1a8] sm:$0x3] %vm287_vm1, %v2482_v0 }
  0x2a PF: > { %v388_v1 = vld [vmem:[%s3283_s1] sm:$0xf]  ;;  %vm438_vm2 = vcmask 1043456   ;;  %v341_v3 = vld [vmem:[%s2542_s30 + $0x8] sm:$0xff]  ;;  %vm389_vm3 = vcmask 64512   ;;  %v342_v6 = vld [vmem:[%s2542_s30 + $0x10] sm:$0xff] }
  0x2b   : > { %v340_v2 = vld [vmem:[%s2542_s30] sm:$0xff]  ;;  %2452 = vmatprep.subr.msk.bf16.mxu0 %vm438_vm2, %v388_v1  ;;  %v440_v4 = vsel %vm438_vm2, %v388_v1, 0  ;;  %v343_v7 = vld [vmem:[%s2542_s30 + $0x18] sm:$0xff]  ;;  %v345_v10 = vld [vmem:[%s2542_s30 + $0x28] sm:$0xff]  ;;  %s2483_s13 = smov 8   ;;  %s2484_s14 = smov 4  }
  0x2c   : > { %v372_v5 = vpack.c.bf16 %v341_v3, %v340_v2  ;;  %v344_v8 = vld [vmem:[%s2542_s30 + $0x20] sm:$0xff]  ;;  %2381 = vmatpush3.bf16.msra.mxu0 %v440_v4  ;;  %v373_v9 = vpack.c.bf16 %v343_v7, %v342_v6  ;;  %v346_v12 = vld [vmem:[%s2542_s30 + $0x30] sm:$0xff]  ;;  %v347_v13 = vld [vmem:[%s2542_s30 + $0x38] sm:$0xff]  ;;  %s2485_s15 = smov 24   ;;  %vm923_vm4 = vcmask 64544   ;;  %vm714_vm5 = vcmask 31744  }
  0x2d   : > { %v374_v11 = vpack.c.bf16 %v345_v10, %v344_v8  ;;  %v348_v14 = vld [vmem:[%s2542_s30 + $0x40] sm:$0xff]  ;;  %v349_v15 = vld [vmem:[%s2542_s30 + $0x48] sm:$0xff]  ;;  %v375_v16 = vpack.c.bf16 %v347_v13, %v346_v12  ;;  %v350_v18 = vld [vmem:[%s2542_s30 + $0x50] sm:$0xff]  ;;  %vm1052_vm6 = vcmask 97344   ;;  %s2486_s20 = smov 12   ;;  %s2487_s21 = smov 28  }
  0x2e   : > { %2382 = vmatprep.mubr.msk.bf16.mxu0 %vm389_vm3, %v372_v5  ;;  %v376_v17 = vpack.c.bf16 %v349_v15, %v348_v14  ;;  %v351_v19 = vld [vmem:[%s2542_s30 + $0x58] sm:$0xff]  ;;  %v352_v20 = vld [vmem:[%s2542_s30 + $0x60] sm:$0xff]  ;;  %v353_v21 = vld [vmem:[%s2542_s30 + $0x68] sm:$0xff]  ;;  %s2488_s22 = smov 16   ;;  %s2489_s23 = smov 32   ;;  %vm1929_vm7 = vcmask 1041408  }
  0x2f   : > { %2383 = vmatmul.mubr.msk.bf16.vlgmr.msra.gmra.mrb[0].mxu0 %vm389_vm3, %v373_v9  ;;  %v377_v22 = vpack.c.bf16 %v351_v19, %v350_v18  ;;  %v378_v23 = vpack.c.bf16 %v353_v21, %v352_v20  ;;  %v354_v24 = vld [vmem:[%s2542_s30 + $0x70] sm:$0xff]  ;;  %v355_v25 = vld [vmem:[%s2542_s30 + $0x78] sm:$0xff]  ;;  %v356_v26 = vld [vmem:[%s2542_s30 + $0x80] sm:$0xff]  ;;  %s2490_s25 = smov 20   ;;  %vm1181_vm8 = vcmask 130144   ;;  %vm1310_vm9 = vcmask 162944  }
  0x30   : > { %2386 = vmatprep.mubr.msk.bf16.mxu0 %vm389_vm3, %v374_v11  ;;  %v357_v27 = vld [vmem:[%s2542_s30 + $0x88] sm:$0xff]  ;;  %v379_v28 = vpack.c.bf16 %v355_v25, %v354_v24  ;;  %v358_v30 = vld [vmem:[%s2542_s30 + $0x90] sm:$0xff]  ;;  %v359_v31 = vld [vmem:[%s2542_s30 + $0x98] sm:$0xff]  ;;  %vm1439_vm10 = vcmask 195744   ;;  %vm1569_vm11 = vcmask 228544   ;;  %vm1698_vm12 = vcmask 261344  }
  0x31   : > { %v380_v29 = vpack.c.bf16 %v357_v27, %v356_v26  ;;  %v360_v32 = vld [vmem:[%s2542_s30 + $0xa0] sm:$0xff]  ;;  %v361_v33 = vld [vmem:[%s2542_s30 + $0xa8] sm:$0xff]  ;;  %v381_v34 = vpack.c.bf16 %v359_v31, %v358_v30  ;;  %v362_v36 = vld [vmem:[%s2542_s30 + $0xb0] sm:$0xff]  ;;  %vm1827_vm13 = vcmask 294144   ;;  %vm1880_vm14 = vcmask 293888  }
  0x32   : > { %v382_v35 = vpack.c.bf16 %v361_v33, %v360_v32  ;;  %v363_v37 = vld [vmem:[%s2542_s30 + $0xb8] sm:$0xff]  ;;  %v364_v38 = vld [vmem:[%s2542_s30 + $0xc0] sm:$0xff]  ;;  %v365_v39 = vld [vmem:[%s2542_s30 + $0xc8] sm:$0xff] }
  0x33   : > { %v383_v40 = vpack.c.bf16 %v363_v37, %v362_v36  ;;  %v384_v41 = vpack.c.bf16 %v365_v39, %v364_v38  ;;  %v366_v42 = vld [vmem:[%s2542_s30 + $0xd0] sm:$0xff]  ;;  %v367_v43 = vld [vmem:[%s2542_s30 + $0xd8] sm:$0xff]  ;;  %v368_v45 = vld [vmem:[%s2542_s30 + $0xe0] sm:$0xff] }
  0x34   : > { %v385_v44 = vpack.c.bf16 %v367_v43, %v366_v42  ;;  %v369_v46 = vld [vmem:[%s2542_s30 + $0xe8] sm:$0xff]  ;;  %v370_v48 = vld [vmem:[%s2542_s30 + $0xf0] sm:$0xff]  ;;  %v371_v49 = vld [vmem:[%s2542_s30 + $0xf8] sm:$0xff] }
  0x35   : > { %v386_v47 = vpack.c.bf16 %v369_v46, %v368_v45  ;;  %v387_v50 = vpack.c.bf16 %v371_v49, %v370_v48  ;;  %v940_v51 = vld [vmem:[#allocation2 + $0x2] sm:$0xff]  ;;  %v941_v52 = vld [vmem:[#allocation2 + $0xa] sm:$0xff]  ;;  %v1487_v54 = vld [vmem:[#allocation2 + $0x198] sm:$0xff] }
  0x36   : > { %v972_v53 = vpack.c.bf16 %v941_v52, %v940_v51  ;;  %v1488_v55 = vld [vmem:[#allocation2 + $0x1a0] sm:$0xff]  ;;  %v812_v58 = vld [vmem:[#allocation2 + $0x9] sm:$0xff] }
  0x37   : > { %2387 = vmatmul.mubr.msk.bf16.gmra.mrb[4].mxu0 %vm389_vm3, %v375_v16  ;;  %v811_v56 = vld [vmem:[#allocation2 + $0x1] sm:$0xff]  ;;  %v1504_v57 = vpack.c.bf16 %v1488_v55, %v1487_v54  ;;  %v2660_v60 = vld [vmem:[%s3284_s2] ss:$0 sm:$0xff] }
  0x38   : > { %2390 = vmatprep.mubr.msk.bf16.mxu0 %vm389_vm3, %v376_v17  ;;  %1004 = vrot.lane.b32.xlu1 %v972_v53, %s2483_s13  ;;  %v843_v59 = vpack.c.bf16 %v812_v58, %v811_v56  ;;  %v747_v61 = vld [vmem:[#allocation2] sm:$0xff]  ;;  %v748_v62 = vld [vmem:[#allocation2 + $0x8] sm:$0xff] }
  0x39   : > { %v2665_v0 = vld [vmem:[%s3285_s3] ss:$0 sm:$0xff]  ;;  %v779_v2 = vpack.c.bf16 %v748_v62, %v747_v61 }
  0x3a   : > { %875 = vrot.lane.b32.xlu0 %v843_v59, %s2484_s14 }
  0x3b   : > { %795 = vst.msk [vmem:[#allocation3] sm:$0xff] %vm714_vm5, %v779_v2 }
  0x3c   : > { %1551 = vrot.lane.b32.xlu1 %v1504_v57, %s2485_s15 }
  0x3f   : > { %2391 = vmatmul.mubr.msk.bf16.gmra.mrb[8].mxu0 %vm389_vm3, %v377_v22 }
  0x40   : > { %2394 = vmatprep.mubr.msk.bf16.mxu0 %vm389_vm3, %v378_v23 }
  0x47   : > { %2395 = vmatmul.mubr.msk.bf16.gmra.mrb[12].mxu0 %vm389_vm3, %v379_v28 }
  0x48   : > { %2398 = vmatprep.mubr.msk.bf16.mxu0 %vm389_vm3, %v380_v29 }
  0x4f   : > { %2399 = vmatmul.mubr.msk.bf16.gmra.mrb[16].mxu0 %vm389_vm3, %v381_v34 }
  0x50   : > { %2402 = vmatprep.mubr.msk.bf16.mxu0 %vm389_vm3, %v382_v35 }
  0x57   : > { %2403 = vmatmul.mubr.msk.bf16.gmra.mrb[20].mxu0 %vm389_vm3, %v383_v40 }
  0x58   : > { %2406 = vmatprep.mubr.msk.bf16.mxu0 %vm389_vm3, %v384_v41 }
  0x5f   : > { %2407 = vmatmul.mubr.msk.bf16.gmra.mrb[24].mxu0 %vm389_vm3, %v385_v44 }
  0x60   : > { %2410 = vmatprep.mubr.msk.bf16.mxu0 %vm389_vm3, %v386_v47 }
  0x67   : > { %2411 = vmatmul.mubr.msk.bf16.gmra.mrb[28].mxu0 %vm389_vm3, %v387_v50 }
  0xaa   : > { %v1005_v10 = vpop.permute.xlu1 %1004 }
  0xac   : > { %v876_v1 = vpop.permute.xlu0 %875 }
  0xad   : > { %924 = vst.msk [vmem:[#allocation3] sm:$0xff] %vm923_vm4, %v876_v1 }
  0xae   : > { %1053 = vst.msk [vmem:[#allocation3] sm:$0xff] %vm1052_vm6, %v1005_v10 }
 0x102   : > { %v2384_v63 = vpop.f32.mrb[0].mxu0 }
 0x103   : > { %v612_v3 = vmul.f32 %v2384_v63, %v2660_v60  ;;  %v476_v4 = vpop.f32.mrb[1].mxu0 }
 0x104   : > { %v610_v5 = vmul.f32 %v2660_v60, %v476_v4  ;;  %v2385_v6 = vpop.f32.mrb[2].mxu0 }
 0x105   : > { %v651_v7 = vadd.f32 %v2665_v0, %v612_v3  ;;  %v613_v8 = vmul.f32 %v2385_v6, %v2660_v60  ;;  %v479_v9 = vpop.f32.mrb[3].mxu0 }
 0x106   : > { %v649_v11 = vadd.f32 %v2665_v0, %v610_v5  ;;  %v611_v12 = vmul.f32 %v2660_v60, %v479_v9 }
 0x107   : > { %v683_v13 = vmax.f32 %v651_v7, 0.0  ;;  %v652_v14 = vadd.f32 %v2665_v0, %v613_v8 }
 0x108   : > { %v681_v15 = vmax.f32 %v649_v11, 0.0  ;;  %v650_v16 = vadd.f32 %v2665_v0, %v611_v12 }
 0x109   : > { %717 = vst.msk [vmem:[#allocation2 + $0x31] sm:$0xff] %vm714_vm5, %v683_v13  ;;  %v684_v17 = vmax.f32 %v652_v14, 0.0 }
 0x10a   : > { %715 = vst.msk [vmem:[#allocation2 + $0x19] sm:$0xff] %vm714_vm5, %v681_v15  ;;  %v682_v18 = vmax.f32 %v650_v16, 0.0  ;;  %v2388_v19 = vpop.f32.mrb[4].mxu0 }
 0x10b   : > { %718 = vst.msk [vmem:[#allocation2 + $0x39] sm:$0xff] %vm714_vm5, %v684_v17  ;;  %v616_v20 = vmul.f32 %v2388_v19, %v2660_v60  ;;  %v492_v21 = vpop.f32.mrb[5].mxu0 }
 0x10c   : > { %716 = vst.msk [vmem:[#allocation2 + $0x21] sm:$0xff] %vm714_vm5, %v682_v18  ;;  %v614_v22 = vmul.f32 %v2660_v60, %v492_v21  ;;  %v2389_v23 = vpop.f32.mrb[6].mxu0 }
 0x10d   : > { %v655_v24 = vadd.f32 %v2665_v0, %v616_v20  ;;  %v617_v25 = vmul.f32 %v2389_v23, %v2660_v60  ;;  %v495_v26 = vpop.f32.mrb[7].mxu0 }
 0x10e   : > { %v653_v27 = vadd.f32 %v2665_v0, %v614_v22  ;;  %v615_v28 = vmul.f32 %v2660_v60, %v495_v26 }
 0x10f   : > { %v687_v29 = vmax.f32 %v655_v24, 0.0  ;;  %v656_v30 = vadd.f32 %v2665_v0, %v617_v25 }
 0x110   : > { %v685_v31 = vmax.f32 %v653_v27, 0.0  ;;  %v654_v32 = vadd.f32 %v2665_v0, %v615_v28  ;;  %v1457_v34 = vld [vmem:[#allocation2 + $0x30] sm:$0xff] }
 0x111   : > { %721 = vst.msk [vmem:[#allocation2 + $0x61] sm:$0xff] %vm714_vm5, %v687_v29  ;;  %v688_v33 = vmax.f32 %v656_v30, 0.0  ;;  %v1069_v42 = vld [vmem:[#allocation2 + $0x18] sm:$0xff] }
 0x112   : > { %v1458_v35 = vld [vmem:[#allocation2 + $0x38] sm:$0xff]  ;;  %719 = vst.msk [vmem:[#allocation2 + $0x49] sm:$0xff] %vm714_vm5, %v685_v31  ;;  %v686_v36 = vmax.f32 %v654_v32, 0.0  ;;  %v2392_v37 = vpop.f32.mrb[8].mxu0 }
 0x113   : > { %v1489_v38 = vpack.c.bf16 %v1458_v35, %v1457_v34  ;;  %722 = vst.msk [vmem:[#allocation2 + $0x69] sm:$0xff] %vm714_vm5, %v688_v33  ;;  %v620_v39 = vmul.f32 %v2392_v37, %v2660_v60  ;;  %v508_v40 = vpop.f32.mrb[9].mxu0  ;;  %v1587_v41 = vld [vmem:[#allocation2 + $0x39] sm:$0xff]  ;;  %v1586_v49 = vld [vmem:[#allocation2 + $0x31] sm:$0xff]  ;;  %v943_v20 = vld [vmem:[#allocation2 + $0x22] sm:$0xff] }
 0x114   : > { %720 = vst.msk [vmem:[#allocation2 + $0x51] sm:$0xff] %vm714_vm5, %v686_v36  ;;  %v1070_v43 = vld [vmem:[#allocation2 + $0x20] sm:$0xff]  ;;  %v618_v44 = vmul.f32 %v2660_v60, %v508_v40  ;;  %v2393_v45 = vpop.f32.mrb[10].mxu0  ;;  %v1618_v53 = vpack.c.bf16 %v1587_v41, %v1586_v49  ;;  %v1715_v55 = vld [vmem:[#allocation2 + $0x32] sm:$0xff] }
 0x115   : > { %1521 = vrot.lane.b32.xlu0 %v1489_v38, %s2485_s15  ;;  %1135 = vrot.lane.b32.xlu1 %v1489_v38, %s2486_s20  ;;  %v2698_v46 = vpack.c.bf16 %v1070_v43, %v1069_v42  ;;  %v659_v47 = vadd.f32 %v2665_v0, %v620_v39  ;;  %v511_v48 = vpop.f32.mrb[11].mxu0  ;;  %797 = vst.msk [vmem:[#allocation3 + $0x10] sm:$0xff] %vm714_vm5, %v1489_v38  ;;  %v1716_v56 = vld [vmem:[#allocation2 + $0x3a] sm:$0xff] }
 0x116   : > { %v657_v50 = vadd.f32 %v2665_v0, %v618_v44  ;;  %v621_v51 = vmul.f32 %v2393_v45, %v2660_v60  ;;  %v619_v52 = vmul.f32 %v2660_v60, %v511_v48  ;;  %v1747_v4 = vpack.c.bf16 %v1716_v56, %v1715_v55  ;;  %v942_v19 = vld [vmem:[#allocation2 + $0x1a] sm:$0xff] }
 0x117   : > { %v691_v54 = vmax.f32 %v659_v47, 0.0  ;;  %796 = vst.msk [vmem:[#allocation3 + $0x8] sm:$0xff] %vm714_vm5, %v2698_v46  ;;  %v814_v21 = vld [vmem:[#allocation2 + $0x21] sm:$0xff]  ;;  %v813_v26 = vld [vmem:[#allocation2 + $0x19] sm:$0xff]  ;;  %v2737_v30 = vpack.c.bf16 %v943_v20, %v942_v19 }
 0x118   : > { %v1075_v57 = vld [vmem:[#allocation2 + $0x60] sm:$0xff]  ;;  %v689_v58 = vmax.f32 %v657_v50, 0.0  ;;  %v660_v59 = vadd.f32 %v2665_v0, %v621_v51  ;;  %v658_v61 = vadd.f32 %v2665_v0, %v619_v52  ;;  %v844_v31 = vpack.c.bf16 %v814_v21, %v813_v26 }
 0x119   : > { %1650 = vrot.lane.b32.xlu0 %v1618_v53, %s2487_s21  ;;  %1264 = vrot.lane.b32.xlu1 %v1618_v53, %s2488_s22  ;;  %725 = vst.msk [vmem:[#allocation2 + $0x91] sm:$0xff] %vm714_vm5, %v691_v54  ;;  %v1459_v62 = vld [vmem:[#allocation2 + $0x48] sm:$0xff] }
 0x11a   : > { %v1076_v63 = vld [vmem:[#allocation2 + $0x68] sm:$0xff]  ;;  %723 = vst.msk [vmem:[#allocation2 + $0x79] sm:$0xff] %vm714_vm5, %v689_v58  ;;  %v692_v1 = vmax.f32 %v660_v59, 0.0  ;;  %v690_v2 = vmax.f32 %v658_v61, 0.0  ;;  %v2396_v3 = vpop.f32.mrb[12].mxu0 }
 0x11b   : > { %v2713_v5 = vpack.c.bf16 %v1076_v63, %v1075_v57  ;;  %v1460_v6 = vld [vmem:[#allocation2 + $0x50] sm:$0xff]  ;;  %v624_v7 = vmul.f32 %v2396_v3, %v2660_v60  ;;  %v524_v8 = vpop.f32.mrb[13].mxu0  ;;  %v1204_v41 = vld [vmem:[#allocation2 + $0x61] sm:$0xff] }
 0x11c   : > { %726 = vst.msk [vmem:[#allocation2 + $0x99] sm:$0xff] %vm714_vm5, %v692_v1  ;;  %v2717_v9 = vpack.c.bf16 %v1460_v6, %v1459_v62  ;;  %724 = vst.msk [vmem:[#allocation2 + $0x81] sm:$0xff] %vm714_vm5, %v690_v2  ;;  %v622_v10 = vmul.f32 %v2660_v60, %v524_v8  ;;  %v2397_v11 = vpop.f32.mrb[14].mxu0  ;;  %v1205_v42 = vld [vmem:[#allocation2 + $0x69] sm:$0xff] }
 0x11d   : > { %1779 = vrot.lane.b32.xlu0 %v1747_v4, %s2489_s23  ;;  %1393 = vrot.lane.b32.xlu1 %v1747_v4, %s2490_s25  ;;  %v663_v12 = vadd.f32 %v2665_v0, %v624_v7  ;;  %v625_v13 = vmul.f32 %v2397_v11, %v2660_v60  ;;  %v527_v14 = vpop.f32.mrb[15].mxu0  ;;  %799 = vst.msk [vmem:[#allocation3 + $0x20] sm:$0xff] %vm714_vm5, %v2713_v5  ;;  %v1333_v63 = vld [vmem:[#allocation2 + $0x62] sm:$0xff]  ;;  %v1334_v1 = vld [vmem:[#allocation2 + $0x6a] sm:$0xff] }
 0x11e   : > { %v661_v15 = vadd.f32 %v2665_v0, %v622_v10  ;;  %v623_v16 = vmul.f32 %v2660_v60, %v527_v14  ;;  %798 = vst.msk [vmem:[#allocation3 + $0x18] sm:$0xff] %vm714_vm5, %v2717_v9  ;;  %v1233_v52 = vpack.c.bf16 %v1205_v42, %v1204_v41 }
 0x11f   : > { %v695_v17 = vmax.f32 %v663_v12, 0.0  ;;  %v664_v18 = vadd.f32 %v2665_v0, %v625_v13  ;;  %v2784_v12 = vpack.c.bf16 %v1334_v1, %v1333_v63 }
 0x120   : > { %v693_v22 = vmax.f32 %v661_v15, 0.0  ;;  %v662_v23 = vadd.f32 %v2665_v0, %v623_v16  ;;  %v1079_v24 = vld [vmem:[#allocation2 + $0x90] sm:$0xff] }
 0x121   : > { %1008 = vrot.lane.b32.xlu0 %v1747_v4, %s2483_s13  ;;  %879 = vrot.lane.b32.xlu1 %v1618_v53, %s2484_s14  ;;  %729 = vst.msk [vmem:[#allocation2 + $0xc1] sm:$0xff] %vm714_vm5, %v695_v17  ;;  %v696_v25 = vmax.f32 %v664_v18, 0.0  ;;  %v1463_v27 = vld [vmem:[#allocation2 + $0x78] sm:$0xff] }
 0x122   : > { %727 = vst.msk [vmem:[#allocation2 + $0xa9] sm:$0xff] %vm714_vm5, %v693_v22  ;;  %v694_v28 = vmax.f32 %v662_v23, 0.0  ;;  %v2400_v29 = vpop.f32.mrb[16].mxu0 }
 0x123   : > { %v1080_v32 = vld [vmem:[#allocation2 + $0x98] sm:$0xff]  ;;  %730 = vst.msk [vmem:[#allocation2 + $0xc9] sm:$0xff] %vm714_vm5, %v696_v25  ;;  %v628_v33 = vmul.f32 %v2400_v29, %v2660_v60  ;;  %v540_v34 = vpop.f32.mrb[17].mxu0  ;;  %v1464_v36 = vld [vmem:[#allocation2 + $0x80] sm:$0xff] }
 0x124   : > { %v2741_v35 = vpack.c.bf16 %v1080_v32, %v1079_v24  ;;  %728 = vst.msk [vmem:[#allocation2 + $0xb1] sm:$0xff] %vm714_vm5, %v694_v28  ;;  %v626_v37 = vmul.f32 %v2660_v60, %v540_v34  ;;  %v2401_v38 = vpop.f32.mrb[18].mxu0  ;;  %v2748_v39 = vpack.c.bf16 %v1464_v36, %v1463_v27  ;;  %v2471_v25 = vld [vmem:[%s3286_s4] sm:$0xff]   ;;  %v2472_v28 = vld [vmem:[%s3286_s4 + $0x8] sm:$0xff]   ;;  %v1589_v29 = vld [vmem:[#allocation2 + $0x51] sm:$0xff] }
 0x125   : > { %1006 = vrot.lane.b32.xlu1 %v2737_v30, %s2483_s13  ;;  %877 = vrot.lane.b32.xlu0 %v844_v31, %s2484_s14  ;;  %v543_v40 = vpop.f32.mrb[19].mxu0  ;;  %v667_v43 = vadd.f32 %v2665_v0, %v628_v33  ;;  %v629_v45 = vmul.f32 %v2401_v38, %v2660_v60 }
 0x126   : > { %v665_v44 = vadd.f32 %v2665_v0, %v626_v37  ;;  %801 = vst.msk [vmem:[#allocation3 + $0x30] sm:$0xff] %vm714_vm5, %v2741_v35  ;;  %v627_v47 = vmul.f32 %v2660_v60, %v543_v40  ;;  %800 = vst.msk [vmem:[#allocation3 + $0x28] sm:$0xff] %vm714_vm5, %v2748_v39  ;;  %2414 = vmatprep.subr.bf16.mxu1 %v2471_v25 }
 0x127   : > { %v699_v49 = vmax.f32 %v667_v43, 0.0  ;;  %v668_v51 = vadd.f32 %v2665_v0, %v629_v45  ;;  %2415 = vmatpush3.bf16.msra.mxu1 %v2471_v25 }
 0x128   : > { %v1083_v48 = vld [vmem:[#allocation2 + $0xc0] sm:$0xff]  ;;  %v697_v50 = vmax.f32 %v665_v44, 0.0  ;;  %v666_v54 = vadd.f32 %v2665_v0, %v627_v47  ;;  %2416 = vmatprep.subr.bf16.mxu1 %v2472_v28  ;;  %v2473_v44 = vld [vmem:[%s3286_s4 + $0x10] ss:$0 sps:$4 sm:$0x33]  }
 0x129   : > { %1133 = vrot.lane.b32.xlu0 %v2698_v46, %s2486_s20  ;;  %1139 = vrot.lane.b32.xlu1 %v2713_v5, %s2486_s20  ;;  %v1467_v53 = vld [vmem:[#allocation2 + $0xa8] sm:$0xff]  ;;  %733 = vst.msk [vmem:[#allocation2 + $0xf1] sm:$0xff] %vm714_vm5, %v699_v49  ;;  %v700_v56 = vmax.f32 %v668_v51, 0.0 }
 0x12a   : > { %v1084_v55 = vld [vmem:[#allocation2 + $0xc8] sm:$0xff]  ;;  %731 = vst.msk [vmem:[#allocation2 + $0xd9] sm:$0xff] %vm714_vm5, %v697_v50  ;;  %v2404_v57 = vpop.f32.mrb[20].mxu0  ;;  %v698_v61 = vmax.f32 %v666_v54, 0.0 }
 0x12b   : > { %v2766_v58 = vpack.c.bf16 %v1084_v55, %v1083_v48  ;;  %v1468_v59 = vld [vmem:[#allocation2 + $0xb0] sm:$0xff]  ;;  %v632_v46 = vmul.f32 %v2404_v57, %v2660_v60  ;;  %v556_v62 = vpop.f32.mrb[21].mxu0  ;;  %734 = vst.msk [vmem:[#allocation2 + $0xf9] sm:$0xff] %vm714_vm5, %v700_v56  ;;  %2417 = vmatpush3.bf16.msra.mxu1 %v2472_v28 }
 0x12c   : > { %v2770_v2 = vpack.c.bf16 %v1468_v59, %v1467_v53  ;;  %v630_v3 = vmul.f32 %v2660_v60, %v556_v62  ;;  %v2405_v4 = vpop.f32.mrb[22].mxu0  ;;  %732 = vst.msk [vmem:[#allocation2 + $0xe1] sm:$0xff] %vm714_vm5, %v698_v61  ;;  %2453 = vmatprep.subr.msk.bf16.mxu1 %vm1929_vm7, %v2473_v44  ;;  %v1931_v53 = vsel %vm1929_vm7, %v2473_v44, 0  ;;  %v1717_v55 = vld [vmem:[#allocation2 + $0x4a] sm:$0xff]  ;;  %v1718_v56 = vld [vmem:[#allocation2 + $0x52] sm:$0xff] }
 0x12d   : > { %1262 = vrot.lane.b32.xlu0 %v844_v31, %s2488_s22  ;;  %1268 = vrot.lane.b32.xlu1 %v1233_v52, %s2488_s22  ;;  %v671_v6 = vadd.f32 %v2665_v0, %v632_v46  ;;  %v633_v7 = vmul.f32 %v2405_v4, %v2660_v60  ;;  %v559_v8 = vpop.f32.mrb[23].mxu0  ;;  %803 = vst.msk [vmem:[#allocation3 + $0x40] sm:$0xff] %vm714_vm5, %v2766_v58  ;;  %v1208_v61 = vld [vmem:[#allocation2 + $0x91] sm:$0xff]  ;;  %v1209_v46 = vld [vmem:[#allocation2 + $0x99] sm:$0xff] }
 0x12e   : > { %v669_v10 = vadd.f32 %v2665_v0, %v630_v3  ;;  %v631_v11 = vmul.f32 %v2660_v60, %v559_v8  ;;  %802 = vst.msk [vmem:[#allocation3 + $0x38] sm:$0xff] %vm714_vm5, %v2770_v2  ;;  %v1748_v59 = vpack.c.bf16 %v1718_v56, %v1717_v55  ;;  %v1235_v3 = vpack.c.bf16 %v1209_v46, %v1208_v61  ;;  %v1338_v8 = vld [vmem:[#allocation2 + $0x9a] sm:$0xff] }
 0x12f   : > { %v703_v13 = vmax.f32 %v671_v6, 0.0  ;;  %v672_v14 = vadd.f32 %v2665_v0, %v633_v7  ;;  %2419 = vmatpush3.bf16.msra.mxu1 %v1931_v53  ;;  %v1337_v7 = vld [vmem:[#allocation2 + $0x92] sm:$0xff] }
 0x130   : > { %v701_v15 = vmax.f32 %v669_v10, 0.0  ;;  %v670_v16 = vadd.f32 %v2665_v0, %v631_v11  ;;  %v1087_v17 = vld [vmem:[#allocation2 + $0xf0] sm:$0xff] }
 0x131   : > { %1391 = vrot.lane.b32.xlu0 %v2737_v30, %s2490_s25  ;;  %1397 = vrot.lane.b32.xlu1 %v2784_v12, %s2490_s25  ;;  %737 = vst.msk [vmem:[#allocation2 + $0x121] sm:$0xff] %vm714_vm5, %v703_v13  ;;  %v704_v18 = vmax.f32 %v672_v14, 0.0  ;;  %v1471_v19 = vld [vmem:[#allocation2 + $0xd8] sm:$0xff]  ;;  %v1593_v14 = vld [vmem:[#allocation2 + $0x81] sm:$0xff] }
 0x132   : > { %735 = vst.msk [vmem:[#allocation2 + $0x109] sm:$0xff] %vm714_vm5, %v701_v15  ;;  %v702_v20 = vmax.f32 %v670_v16, 0.0  ;;  %v1088_v21 = vld [vmem:[#allocation2 + $0xf8] sm:$0xff]  ;;  %v2408_v26 = vpop.f32.mrb[24].mxu0 }
 0x133   : > { %738 = vst.msk [vmem:[#allocation2 + $0x129] sm:$0xff] %vm714_vm5, %v704_v18  ;;  %v2795_v22 = vpack.c.bf16 %v1088_v21, %v1087_v17  ;;  %v1472_v23 = vld [vmem:[#allocation2 + $0xe0] sm:$0xff]  ;;  %v636_v27 = vmul.f32 %v2408_v26, %v2660_v60  ;;  %v572_v32 = vpop.f32.mrb[25].mxu0 }
 0x134   : > { %736 = vst.msk [vmem:[#allocation2 + $0x111] sm:$0xff] %vm714_vm5, %v702_v20  ;;  %v2801_v24 = vpack.c.bf16 %v1472_v23, %v1471_v19  ;;  %v2409_v33 = vpop.f32.mrb[26].mxu0  ;;  %v634_v38 = vmul.f32 %v2660_v60, %v572_v32  ;;  %v1592_v13 = vld [vmem:[#allocation2 + $0x79] sm:$0xff] }
 0x135   : > { %1525 = vrot.lane.b32.xlu0 %v2713_v5, %s2485_s15  ;;  %883 = vrot.lane.b32.xlu1 %v1233_v52, %s2484_s14  ;;  %805 = vst.msk [vmem:[#allocation3 + $0x50] sm:$0xff] %vm714_vm5, %v2795_v22  ;;  %v1588_v5 = vld [vmem:[#allocation2 + $0x49] sm:$0xff]  ;;  %v675_v31 = vadd.f32 %v2665_v0, %v636_v27  ;;  %v637_v40 = vmul.f32 %v2409_v33, %v2660_v60  ;;  %v575_v49 = vpop.f32.mrb[27].mxu0 }
 0x136   : > { %804 = vst.msk [vmem:[#allocation3 + $0x48] sm:$0xff] %vm714_vm5, %v2801_v24  ;;  %v1619_v41 = vpack.c.bf16 %v1589_v29, %v1588_v5  ;;  %v673_v45 = vadd.f32 %v2665_v0, %v634_v38  ;;  %v635_v50 = vmul.f32 %v2660_v60, %v575_v49  ;;  %v1621_v19 = vpack.c.bf16 %v1593_v14, %v1592_v13  ;;  %v1721_v29 = vld [vmem:[#allocation2 + $0x7a] sm:$0xff]  ;;  %v1342_v38 = vld [vmem:[#allocation2 + $0xca] sm:$0xff]  ;;  %v1730_v14 = vld [vmem:[#allocation2 + $0xe2] sm:$0xff] }
 0x137   : > { %v707_v37 = vmax.f32 %v675_v31, 0.0  ;;  %v676_v47 = vadd.f32 %v2665_v0, %v637_v40  ;;  %v1729_v13 = vld [vmem:[#allocation2 + $0xda] sm:$0xff] }
 0x138   : > { %v1091_v30 = vld [vmem:[#allocation2 + $0x120] sm:$0xff]  ;;  %v705_v51 = vmax.f32 %v673_v45, 0.0  ;;  %v674_v54 = vadd.f32 %v2665_v0, %v635_v50  ;;  %v1725_v45 = vld [vmem:[#allocation2 + $0xaa] sm:$0xff] }
 0x139   : > { %1654 = vrot.lane.b32.xlu0 %v1233_v52, %s2487_s21  ;;  %1523 = vrot.lane.b32.xlu1 %v2717_v9, %s2485_s15  ;;  %v1475_v34 = vld [vmem:[#allocation2 + $0x108] sm:$0xff]  ;;  %741 = vst.msk [vmem:[#allocation2 + $0x151] sm:$0xff] %vm714_vm5, %v707_v37  ;;  %v708_v52 = vmax.f32 %v676_v47, 0.0  ;;  %v1726_v47 = vld [vmem:[#allocation2 + $0xb2] sm:$0xff] }
 0x13a   : > { %v1092_v36 = vld [vmem:[#allocation2 + $0x128] sm:$0xff]  ;;  %739 = vst.msk [vmem:[#allocation2 + $0x139] sm:$0xff] %vm714_vm5, %v705_v51  ;;  %v706_v57 = vmax.f32 %v674_v54, 0.0  ;;  %v2412_v11 = vpop.f32.mrb[28].mxu0  ;;  %v1752_v49 = vpack.c.bf16 %v1726_v47, %v1725_v45  ;;  %v1216_v50 = vld [vmem:[#allocation2 + $0xf1] sm:$0xff]  ;;  %v1217_v51 = vld [vmem:[#allocation2 + $0xf9] sm:$0xff] }
 0x13b   : > { %v2820_v42 = vpack.c.bf16 %v1092_v36, %v1091_v30  ;;  %v1476_v43 = vld [vmem:[#allocation2 + $0x110] sm:$0xff]  ;;  %742 = vst.msk [vmem:[#allocation2 + $0x159] sm:$0xff] %vm714_vm5, %v708_v52  ;;  %v588_v15 = vpop.f32.mrb[29].mxu0  ;;  %v1722_v30 = vld [vmem:[#allocation2 + $0x82] sm:$0xff]  ;;  %v1239_v54 = vpack.c.bf16 %v1217_v51, %v1216_v50 }
 0x13c   : > { %v2828_v48 = vpack.c.bf16 %v1476_v43, %v1475_v34  ;;  %740 = vst.msk [vmem:[#allocation2 + $0x141] sm:$0xff] %vm714_vm5, %v706_v57  ;;  %v2413_v17 = vpop.f32.mrb[30].mxu0  ;;  %v638_v18 = vmul.f32 %v2660_v60, %v588_v15  ;;  %v1750_v32 = vpack.c.bf16 %v1722_v30, %v1721_v29  ;;  %v1341_v37 = vld [vmem:[#allocation2 + $0xc2] sm:$0xff]  ;;  %v1597_v43 = vld [vmem:[#allocation2 + $0xb1] sm:$0xff] }
 0x13d   : > { %1783 = vrot.lane.b32.xlu0 %v2784_v12, %s2489_s23  ;;  %1652 = vrot.lane.b32.xlu1 %v1619_v41, %s2487_s21  ;;  %807 = vst.msk [vmem:[#allocation3 + $0x60] sm:$0xff] %vm714_vm5, %v2820_v42  ;;  %v591_v25 = vpop.f32.mrb[31].mxu0  ;;  %v1345_v57 = vld [vmem:[#allocation2 + $0xf2] sm:$0xff] }
 0x13e   : > { %806 = vst.msk [vmem:[#allocation3 + $0x58] sm:$0xff] %vm714_vm5, %v2828_v48  ;;  %v677_v21 = vadd.f32 %v2665_v0, %v638_v18  ;;  %v639_v26 = vmul.f32 %v2660_v60, %v591_v25  ;;  %v1220_v18 = vld [vmem:[#allocation2 + $0x121] sm:$0xff] }
 0x140   : > { %v1095_v62 = vld [vmem:[#allocation2 + $0x150] sm:$0xff]  ;;  %v709_v27 = vmax.f32 %v677_v21, 0.0  ;;  %v678_v5 = vadd.f32 %v2665_v0, %v639_v26  ;;  %v1349_v26 = vld [vmem:[#allocation2 + $0x122] sm:$0xff] }
 0x141   : > { %1012 = vrot.lane.b32.xlu0 %v2784_v12, %s2483_s13  ;;  %881 = vrot.lane.b32.xlu1 %v1619_v41, %s2484_s14  ;;  %v1479_v4 = vld [vmem:[#allocation2 + $0x138] sm:$0xff]  ;;  %v640_v12 = vmul.f32 %v2412_v11, %v2660_v60 }
 0x142   : > { %v1096_v63 = vld [vmem:[#allocation2 + $0x158] sm:$0xff]  ;;  %743 = vst.msk [vmem:[#allocation2 + $0x169] sm:$0xff] %vm714_vm5, %v709_v27  ;;  %v710_v31 = vmax.f32 %v678_v5, 0.0  ;;  %v1350_v27 = vld [vmem:[#allocation2 + $0x12a] sm:$0xff] }
 0x143   : > { %v2847_v1 = vpack.c.bf16 %v1096_v63, %v1095_v62  ;;  %v1480_v6 = vld [vmem:[#allocation2 + $0x140] sm:$0xff]  ;;  %v679_v16 = vadd.f32 %v2665_v0, %v640_v12  ;;  %v1370_v29 = vpack.c.bf16 %v1350_v27, %v1349_v26 }
 0x144   : > { %v2855_v10 = vpack.c.bf16 %v1480_v6, %v1479_v4  ;;  %744 = vst.msk [vmem:[#allocation2 + $0x171] sm:$0xff] %vm714_vm5, %v710_v31  ;;  %v1600_v6 = vld [vmem:[#allocation2 + $0xd9] sm:$0xff] }
 0x145   : > { %1781 = vrot.lane.b32.xlu0 %v1748_v59, %s2489_s23  ;;  %1010 = vrot.lane.b32.xlu1 %v1748_v59, %s2483_s13  ;;  %809 = vst.msk [vmem:[#allocation3 + $0x70] sm:$0xff] %vm714_vm5, %v2847_v1  ;;  %v711_v20 = vmax.f32 %v679_v16, 0.0  ;;  %v1225_v50 = vld [vmem:[#allocation2 + $0x159] sm:$0xff] }
 0x146   : > { %808 = vst.msk [vmem:[#allocation3 + $0x68] sm:$0xff] %vm714_vm5, %v2855_v10 }
 0x147   : > { %745 = vst.msk [vmem:[#allocation2 + $0x181] sm:$0xff] %vm714_vm5, %v711_v20 }
 0x149   : > { %1137 = vrot.lane.b32.xlu0 %v2717_v9, %s2486_s20  ;;  %1143 = vrot.lane.b32.xlu1 %v2741_v35, %s2486_s20  ;;  %v1364_v9 = vpack.c.bf16 %v1338_v8, %v1337_v7  ;;  %v1483_v34 = vld [vmem:[#allocation2 + $0x168] sm:$0xff] }
 0x14a   : > { %v1601_v7 = vld [vmem:[#allocation2 + $0xe1] sm:$0xff] }
 0x14b   : > { %v1484_v36 = vld [vmem:[#allocation2 + $0x170] sm:$0xff] }
 0x14c   : > { %v2891_v40 = vpack.c.bf16 %v1484_v36, %v1483_v34 }
 0x14d   : > { %1266 = vrot.lane.b32.xlu0 %v1619_v41, %s2488_s22  ;;  %1272 = vrot.lane.b32.xlu1 %v1235_v3, %s2488_s22  ;;  %v1366_v41 = vpack.c.bf16 %v1342_v38, %v1341_v37 }
 0x14e   : > { %810 = vst.msk [vmem:[#allocation3 + $0x78] sm:$0xff] %vm714_vm5, %v2891_v40 }
 0x151   : > { %1395 = vrot.lane.b32.xlu0 %v1748_v59, %s2490_s25  ;;  %1401 = vrot.lane.b32.xlu1 %v1364_v9, %s2490_s25  ;;  %v1346_v59 = vld [vmem:[#allocation2 + $0xfa] sm:$0xff] }
 0x152   : > { %v1368_v62 = vpack.c.bf16 %v1346_v59, %v1345_v57  ;;  %v1354_v57 = vld [vmem:[#allocation2 + $0x15a] sm:$0xff] }
 0x155   : > { %1529 = vrot.lane.b32.xlu0 %v2741_v35, %s2485_s15  ;;  %887 = vrot.lane.b32.xlu1 %v1235_v3, %s2484_s14  ;;  %v641_v35 = vmul.f32 %v2413_v17, %v2660_v60  ;;  %v1212_v60 = vld [vmem:[#allocation2 + $0xc1] sm:$0xff]  ;;  %v1754_v17 = vpack.c.bf16 %v1730_v14, %v1729_v13 }
 0x156   : > { %v1738_v13 = vld [vmem:[#allocation2 + $0x142] sm:$0xff] }
 0x157   : > { %v680_v23 = vadd.f32 %v2665_v0, %v641_v35  ;;  %v1213_v0 = vld [vmem:[#allocation2 + $0xc9] sm:$0xff]  ;;  %v1099_v14 = vld [vmem:[#allocation2 + $0x180] sm:$0xff] }
 0x158   : > { %v1237_v33 = vpack.c.bf16 %v1213_v0, %v1212_v60  ;;  %v1221_v35 = vld [vmem:[#allocation2 + $0x129] sm:$0xff] }
 0x159   : > { %1658 = vrot.lane.b32.xlu0 %v1235_v3, %s2487_s21  ;;  %1527 = vrot.lane.b32.xlu1 %v2748_v39, %s2485_s15  ;;  %v712_v28 = vmax.f32 %v680_v23, 0.0  ;;  %v1241_v21 = vpack.c.bf16 %v1221_v35, %v1220_v18  ;;  %v1604_v0 = vld [vmem:[#allocation2 + $0x109] sm:$0xff] }
 0x15b   : > { %746 = vst.msk [vmem:[#allocation2 + $0x189] sm:$0xff] %vm714_vm5, %v712_v28 }
 0x15d   : > { %1787 = vrot.lane.b32.xlu0 %v1364_v9, %s2489_s23  ;;  %1656 = vrot.lane.b32.xlu1 %v1621_v19, %s2487_s21 }
 0x161   : > { %1016 = vrot.lane.b32.xlu0 %v1364_v9, %s2483_s13  ;;  %885 = vrot.lane.b32.xlu1 %v1621_v19, %s2484_s14  ;;  %v1625_v9 = vpack.c.bf16 %v1601_v7, %v1600_v6  ;;  %v1609_v6 = vld [vmem:[#allocation2 + $0x141] sm:$0xff] }
 0x165   : > { %1785 = vrot.lane.b32.xlu0 %v1750_v32, %s2489_s23  ;;  %1014 = vrot.lane.b32.xlu1 %v1750_v32, %s2483_s13 }
 0x169   : > { %1141 = vrot.lane.b32.xlu0 %v2748_v39, %s2486_s20  ;;  %1147 = vrot.lane.b32.xlu1 %v2766_v58, %s2486_s20  ;;  %v1596_v39 = vld [vmem:[#allocation2 + $0xa9] sm:$0xff] }
 0x16a   : > { %v1623_v44 = vpack.c.bf16 %v1597_v43, %v1596_v39  ;;  %v1733_v39 = vld [vmem:[#allocation2 + $0x10a] sm:$0xff]  ;;  %v1734_v43 = vld [vmem:[#allocation2 + $0x112] sm:$0xff] }
 0x16b   : > { %v1756_v47 = vpack.c.bf16 %v1734_v43, %v1733_v39  ;;  %v1616_v43 = vld [vmem:[#allocation2 + $0x199] sm:$0xff] }
 0x16d   : > { %1270 = vrot.lane.b32.xlu0 %v1621_v19, %s2488_s22  ;;  %1276 = vrot.lane.b32.xlu1 %v1237_v33, %s2488_s22 }
 0x171   : > { %1399 = vrot.lane.b32.xlu0 %v1750_v32, %s2490_s25  ;;  %1405 = vrot.lane.b32.xlu1 %v1366_v41, %s2490_s25 }
 0x175   : > { %1533 = vrot.lane.b32.xlu0 %v2766_v58, %s2485_s15  ;;  %891 = vrot.lane.b32.xlu1 %v1237_v33, %s2484_s14  ;;  %v2909_v58 = vpop.permute.xlu1 %1551 }
 0x179   : > { %1662 = vrot.lane.b32.xlu0 %v1237_v33, %s2487_s21  ;;  %1531 = vrot.lane.b32.xlu1 %v2770_v2, %s2485_s15  ;;  %v1605_v33 = vld [vmem:[#allocation2 + $0x111] sm:$0xff] }
 0x17a   : > { %v1627_v36 = vpack.c.bf16 %v1605_v33, %v1604_v0  ;;  %v1613_v0 = vld [vmem:[#allocation2 + $0x171] sm:$0xff] }
 0x17d   : > { %1791 = vrot.lane.b32.xlu0 %v1366_v41, %s2489_s23  ;;  %1660 = vrot.lane.b32.xlu1 %v1623_v44, %s2487_s21 }
 0x181   : > { %1020 = vrot.lane.b32.xlu0 %v1366_v41, %s2483_s13  ;;  %889 = vrot.lane.b32.xlu1 %v1623_v44, %s2484_s14 }
 0x185   : > { %1789 = vrot.lane.b32.xlu0 %v1752_v49, %s2489_s23  ;;  %1018 = vrot.lane.b32.xlu1 %v1752_v49, %s2483_s13 }
 0x187   : > { %v1522_v52 = vpop.permute.xlu0 %1521  ;;  %v1136_v53 = vpop.permute.xlu1 %1135 }
 0x189   : > { %1145 = vrot.lane.b32.xlu0 %v2770_v2, %s2486_s20  ;;  %1151 = vrot.lane.b32.xlu1 %v2795_v22, %s2486_s20 }
 0x18b   : > { %v1651_v55 = vpop.permute.xlu0 %1650  ;;  %v1265_v56 = vpop.permute.xlu1 %1264 }
 0x18d   : > { %1274 = vrot.lane.b32.xlu0 %v1623_v44, %s2488_s22  ;;  %1280 = vrot.lane.b32.xlu1 %v1239_v54, %s2488_s22 }
 0x18f   : > { %v1780_v61 = vpop.permute.xlu0 %1779  ;;  %v1394_v46 = vpop.permute.xlu1 %1393 }
 0x191   : > { %1403 = vrot.lane.b32.xlu0 %v1752_v49, %s2490_s25  ;;  %1409 = vrot.lane.b32.xlu1 %v1368_v62, %s2490_s25  ;;  %v1224_v49 = vld [vmem:[#allocation2 + $0x151] sm:$0xff] }
 0x193   : > { %v1009_v2 = vpop.permute.xlu0 %1008  ;;  %v880_v63 = vpop.permute.xlu1 %879 }
 0x194   : > { %926 = vst.msk [vmem:[#allocation3 + $0x10] sm:$0xff] %vm923_vm4, %v880_v63 }
 0x195   : > { %1537 = vrot.lane.b32.xlu0 %v2795_v22, %s2485_s15  ;;  %895 = vrot.lane.b32.xlu1 %v1239_v54, %s2484_s14  ;;  %1055 = vst.msk [vmem:[#allocation3 + $0x10] sm:$0xff] %vm1052_vm6, %v1009_v2 }
 0x197   : > { %v1007_v3 = vpop.permute.xlu1 %1006  ;;  %v878_v4 = vpop.permute.xlu0 %877 }
 0x198   : > { %925 = vst.msk [vmem:[#allocation3 + $0x8] sm:$0xff] %vm923_vm4, %v878_v4  ;;  %v1608_v4 = vld [vmem:[#allocation2 + $0x139] sm:$0xff] }
 0x199   : > { %1054 = vst.msk [vmem:[#allocation3 + $0x8] sm:$0xff] %vm1052_vm6, %v1007_v3  ;;  %1666 = vrot.lane.b32.xlu0 %v1239_v54, %s2487_s21  ;;  %1535 = vrot.lane.b32.xlu1 %v2801_v24, %s2485_s15 }
 0x19a   : > { %1183 = vst.msk [vmem:[#allocation3 + $0x8] sm:$0xff] %vm1181_vm8, %v1136_v53  ;;  %v1243_v53 = vpack.c.bf16 %v1225_v50, %v1224_v49 }
 0x19b   : > { %v1134_v22 = vpop.permute.xlu0 %1133  ;;  %v1140_v8 = vpop.permute.xlu1 %1139  ;;  %1312 = vst.msk [vmem:[#allocation3 + $0x8] sm:$0xff] %vm1310_vm9, %v1265_v56  ;;  %v1353_v56 = vld [vmem:[#allocation2 + $0x152] sm:$0xff] }
 0x19c   : > { %1182 = vst.msk [vmem:[#allocation3] sm:$0xff] %vm1181_vm8, %v1134_v22  ;;  %v1629_v22 = vpack.c.bf16 %v1609_v6, %v1608_v4 }
 0x19d   : > { %1441 = vst.msk [vmem:[#allocation3 + $0x8] sm:$0xff] %vm1439_vm10, %v1394_v46  ;;  %1795 = vrot.lane.b32.xlu0 %v1368_v62, %s2489_s23  ;;  %1664 = vrot.lane.b32.xlu1 %v1625_v9, %s2487_s21 }
 0x19f   : > { %v1263_v11 = vpop.permute.xlu0 %1262  ;;  %v1269_v12 = vpop.permute.xlu1 %1268 }
 0x1a0   : > { %1311 = vst.msk [vmem:[#allocation3] sm:$0xff] %vm1310_vm9, %v1263_v11 }
 0x1a1   : > { %1024 = vrot.lane.b32.xlu0 %v1368_v62, %s2483_s13  ;;  %893 = vrot.lane.b32.xlu1 %v1625_v9, %s2484_s14 }
 0x1a3   : > { %v1392_v15 = vpop.permute.xlu0 %1391  ;;  %v1398_v16 = vpop.permute.xlu1 %1397 }
 0x1a4   : > { %1440 = vst.msk [vmem:[#allocation3] sm:$0xff] %vm1439_vm10, %v1392_v15  ;;  %v1100_v15 = vld [vmem:[#allocation2 + $0x188] sm:$0xff] }
 0x1a5   : > { %1570 = vst.msk [vmem:[#allocation3] sm:$0xff] %vm1569_vm11, %v1522_v52  ;;  %1793 = vrot.lane.b32.xlu0 %v1754_v17, %s2489_s23  ;;  %1022 = vrot.lane.b32.xlu1 %v1754_v17, %s2483_s13  ;;  %v1116_v35 = vpack.c.bf16 %v1100_v15, %v1099_v14 }
 0x1a6   : > { %1699 = vst.msk [vmem:[#allocation3] sm:$0xff] %vm1698_vm12, %v1651_v55 }
 0x1a7   : > { %1828 = vst.msk [vmem:[#allocation3] sm:$0xff] %vm1827_vm13, %v1780_v61  ;;  %v1526_v19 = vpop.permute.xlu0 %1525  ;;  %v884_v20 = vpop.permute.xlu1 %883 }
 0x1a8   : > { %928 = vst.msk [vmem:[#allocation3 + $0x20] sm:$0xff] %vm923_vm4, %v884_v20  ;;  %v1229_v20 = vld [vmem:[#allocation2 + $0x189] sm:$0xff] }
 0x1a9   : > { %1149 = vrot.lane.b32.xlu0 %v2801_v24, %s2486_s20  ;;  %1155 = vrot.lane.b32.xlu1 %v2820_v42, %s2486_s20 }
 0x1ab   : > { %v1655_v23 = vpop.permute.xlu0 %1654  ;;  %v1524_v25 = vpop.permute.xlu1 %1523 }
 0x1ac   : > { %1571 = vst.msk [vmem:[#allocation3 + $0x8] sm:$0xff] %vm1569_vm11, %v1524_v25 }
 0x1ad   : > { %1278 = vrot.lane.b32.xlu0 %v1625_v9, %s2488_s22  ;;  %1284 = vrot.lane.b32.xlu1 %v1241_v21, %s2488_s22 }
 0x1ae   : > { %v1844_v28 = vld [vmem:[#allocation3] sm:$0xff] }
 0x1af   : > { %2420 = vmatprep.mubr.msk.bf16.mxu1 %vm1880_vm14, %v1844_v28  ;;  %v1784_v5 = vpop.permute.xlu0 %1783  ;;  %v1653_v24 = vpop.permute.xlu1 %1652  ;;  %v1357_v28 = vld [vmem:[#allocation2 + $0x182] sm:$0xff] }
 0x1b0   : > { %1700 = vst.msk [vmem:[#allocation3 + $0x8] sm:$0xff] %vm1698_vm12, %v1653_v24 }
 0x1b1   : > { %1407 = vrot.lane.b32.xlu0 %v1754_v17, %s2490_s25  ;;  %1413 = vrot.lane.b32.xlu1 %v1370_v29, %s2490_s25 }
 0x1b3   : > { %v1013_v30 = vpop.permute.xlu0 %1012  ;;  %v882_v31 = vpop.permute.xlu1 %881 }
 0x1b4   : > { %1057 = vst.msk [vmem:[#allocation3 + $0x20] sm:$0xff] %vm1052_vm6, %v1013_v30 }
 0x1b5   : > { %927 = vst.msk [vmem:[#allocation3 + $0x18] sm:$0xff] %vm923_vm4, %v882_v31  ;;  %1541 = vrot.lane.b32.xlu0 %v2820_v42, %s2485_s15  ;;  %899 = vrot.lane.b32.xlu1 %v1241_v21, %s2484_s14 }
 0x1b7   : > { %v1782_v32 = vpop.permute.xlu0 %1781  ;;  %v1011_v60 = vpop.permute.xlu1 %1010 }
 0x1b8   : > { %1829 = vst.msk [vmem:[#allocation3 + $0x8] sm:$0xff] %vm1827_vm13, %v1782_v32 }
 0x1b9   : > { %1056 = vst.msk [vmem:[#allocation3 + $0x18] sm:$0xff] %vm1052_vm6, %v1011_v60  ;;  %1670 = vrot.lane.b32.xlu0 %v1241_v21, %s2487_s21  ;;  %1539 = vrot.lane.b32.xlu1 %v2828_v48, %s2485_s15  ;;  %v1612_v60 = vld [vmem:[#allocation2 + $0x169] sm:$0xff] }
 0x1ba   : > { %1185 = vst.msk [vmem:[#allocation3 + $0x18] sm:$0xff] %vm1181_vm8, %v1140_v8 }
 0x1bb   : > { %1314 = vst.msk [vmem:[#allocation3 + $0x18] sm:$0xff] %vm1310_vm9, %v1269_v12  ;;  %v1138_v42 = vpop.permute.xlu0 %1137  ;;  %v1144_v34 = vpop.permute.xlu1 %1143  ;;  %v1737_v12 = vld [vmem:[#allocation2 + $0x13a] sm:$0xff] }
 0x1bc   : > { %1443 = vst.msk [vmem:[#allocation3 + $0x18] sm:$0xff] %vm1439_vm10, %v1398_v16  ;;  %v1758_v18 = vpack.c.bf16 %v1738_v13, %v1737_v12 }
 0x1bd   : > { %1184 = vst.msk [vmem:[#allocation3 + $0x10] sm:$0xff] %vm1181_vm8, %v1138_v42  ;;  %1799 = vrot.lane.b32.xlu0 %v1370_v29, %s2489_s23  ;;  %1668 = vrot.lane.b32.xlu1 %v1627_v36, %s2487_s21 }
 0x1bf   : > { %v1267_v37 = vpop.permute.xlu0 %1266  ;;  %v1273_v38 = vpop.permute.xlu1 %1272  ;;  %v1845_v41 = vld [vmem:[#allocation3 + $0x8] sm:$0xff] }
 0x1c0   : > { %1313 = vst.msk [vmem:[#allocation3 + $0x10] sm:$0xff] %vm1310_vm9, %v1267_v37  ;;  %2421 = vmatmul.mubr.msk.bf16.vlgmr.msra.gmra.mrb[0].mxu1 %vm1880_vm14, %v1845_v41  ;;  %v1742_v37 = vld [vmem:[#allocation2 + $0x172] sm:$0xff] }
 0x1c1   : > { %1028 = vrot.lane.b32.xlu0 %v1370_v29, %s2483_s13  ;;  %897 = vrot.lane.b32.xlu1 %v1627_v36, %s2484_s14 }
 0x1c3   : > { %v1396_v44 = vpop.permute.xlu0 %1395  ;;  %v1402_v45 = vpop.permute.xlu1 %1401 }
 0x1c4   : > { %1442 = vst.msk [vmem:[#allocation3 + $0x10] sm:$0xff] %vm1439_vm10, %v1396_v44  ;;  %v1617_v44 = vld [vmem:[#allocation2 + $0x1a1] sm:$0xff] }
 0x1c5   : > { %1572 = vst.msk [vmem:[#allocation3 + $0x10] sm:$0xff] %vm1569_vm11, %v1526_v19  ;;  %1797 = vrot.lane.b32.xlu0 %v1756_v47, %s2489_s23  ;;  %1026 = vrot.lane.b32.xlu1 %v1756_v47, %s2483_s13  ;;  %v1228_v19 = vld [vmem:[#allocation2 + $0x181] sm:$0xff]  ;;  %v1633_v50 = vpack.c.bf16 %v1617_v44, %v1616_v43 }
 0x1c6   : > { %1701 = vst.msk [vmem:[#allocation3 + $0x10] sm:$0xff] %vm1698_vm12, %v1655_v23  ;;  %v1245_v25 = vpack.c.bf16 %v1229_v20, %v1228_v19 }
 0x1c7   : > { %1830 = vst.msk [vmem:[#allocation3 + $0x10] sm:$0xff] %vm1827_vm13, %v1784_v5  ;;  %v1530_v51 = vpop.permute.xlu0 %1529  ;;  %v888_v52 = vpop.permute.xlu1 %887  ;;  %v1358_v5 = vld [vmem:[#allocation2 + $0x18a] sm:$0xff] }
 0x1c8   : > { %930 = vst.msk [vmem:[#allocation3 + $0x30] sm:$0xff] %vm923_vm4, %v888_v52  ;;  %v1374_v31 = vpack.c.bf16 %v1358_v5, %v1357_v28  ;;  %v1746_v52 = vld [vmem:[#allocation2 + $0x1a2] sm:$0xff] }
 0x1c9   : > { %1153 = vrot.lane.b32.xlu0 %v2828_v48, %s2486_s20  ;;  %1159 = vrot.lane.b32.xlu1 %v2847_v1, %s2486_s20  ;;  %v1372_v48 = vpack.c.bf16 %v1354_v57, %v1353_v56 }
 0x1cb   : > { %v1659_v54 = vpop.permute.xlu0 %1658  ;;  %v1528_v55 = vpop.permute.xlu1 %1527 }
 0x1cc   : > { %1573 = vst.msk [vmem:[#allocation3 + $0x18] sm:$0xff] %vm1569_vm11, %v1528_v55 }
 0x1cd   : > { %1282 = vrot.lane.b32.xlu0 %v1627_v36, %s2488_s22  ;;  %1288 = vrot.lane.b32.xlu1 %v1243_v53, %s2488_s22  ;;  %v1741_v36 = vld [vmem:[#allocation2 + $0x16a] sm:$0xff] }
 0x1ce   : > { %v1846_v59 = vld [vmem:[#allocation3 + $0x10] sm:$0xff]  ;;  %v1760_v39 = vpack.c.bf16 %v1742_v37, %v1741_v36 }
 0x1cf   : > { %2424 = vmatprep.mubr.msk.bf16.mxu1 %vm1880_vm14, %v1846_v59  ;;  %v1788_v61 = vpop.permute.xlu0 %1787  ;;  %v1657_v46 = vpop.permute.xlu1 %1656 }
 0x1d0   : > { %1702 = vst.msk [vmem:[#allocation3 + $0x18] sm:$0xff] %vm1698_vm12, %v1657_v46 }
 0x1d1   : > { %1411 = vrot.lane.b32.xlu0 %v1756_v47, %s2490_s25  ;;  %1417 = vrot.lane.b32.xlu1 %v1372_v48, %s2490_s25 }
 0x1d3   : > { %v1017_v62 = vpop.permute.xlu0 %1016  ;;  %v886_v2 = vpop.permute.xlu1 %885 }
 0x1d4   : > { %1059 = vst.msk [vmem:[#allocation3 + $0x30] sm:$0xff] %vm1052_vm6, %v1017_v62 }
 0x1d5   : > { %929 = vst.msk [vmem:[#allocation3 + $0x28] sm:$0xff] %vm923_vm4, %v886_v2  ;;  %1545 = vrot.lane.b32.xlu0 %v2847_v1, %s2485_s15  ;;  %903 = vrot.lane.b32.xlu1 %v1243_v53, %s2484_s14 }
 0x1d7   : > { %v1786_v63 = vpop.permute.xlu0 %1785  ;;  %v1015_v3 = vpop.permute.xlu1 %1014 }
 0x1d8   : > { %1831 = vst.msk [vmem:[#allocation3 + $0x18] sm:$0xff] %vm1827_vm13, %v1786_v63 }
 0x1d9   : > { %1058 = vst.msk [vmem:[#allocation3 + $0x28] sm:$0xff] %vm1052_vm6, %v1015_v3  ;;  %1674 = vrot.lane.b32.xlu0 %v1243_v53, %s2487_s21  ;;  %1543 = vrot.lane.b32.xlu1 %v2855_v10, %s2485_s15 }
 0x1da   : > { %1187 = vst.msk [vmem:[#allocation3 + $0x28] sm:$0xff] %vm1181_vm8, %v1144_v34  ;;  %v1631_v34 = vpack.c.bf16 %v1613_v0, %v1612_v60 }
 0x1db   : > { %1316 = vst.msk [vmem:[#allocation3 + $0x28] sm:$0xff] %vm1310_vm9, %v1273_v38  ;;  %v1142_v1 = vpop.permute.xlu0 %1141  ;;  %v3009_v7 = vpop.permute.xlu1 %1147 }
 0x1dc   : > { %1445 = vst.msk [vmem:[#allocation3 + $0x28] sm:$0xff] %vm1439_vm10, %v1402_v45 }
 0x1dd   : > { %1186 = vst.msk [vmem:[#allocation3 + $0x20] sm:$0xff] %vm1181_vm8, %v1142_v1  ;;  %1803 = vrot.lane.b32.xlu0 %v1372_v48, %s2489_s23  ;;  %1672 = vrot.lane.b32.xlu1 %v1629_v22, %s2487_s21 }
 0x1df   : > { %v1271_v8 = vpop.permute.xlu0 %1270  ;;  %v1277_v9 = vpop.permute.xlu1 %1276  ;;  %v1847_v11 = vld [vmem:[#allocation3 + $0x18] sm:$0xff] }
 0x1e0   : > { %1315 = vst.msk [vmem:[#allocation3 + $0x20] sm:$0xff] %vm1310_vm9, %v1271_v8  ;;  %2425 = vmatmul.mubr.msk.bf16.gmra.mrb[4].mxu1 %vm1880_vm14, %v1847_v11 }
 0x1e1   : > { %1032 = vrot.lane.b32.xlu0 %v1372_v48, %s2483_s13  ;;  %901 = vrot.lane.b32.xlu1 %v1629_v22, %s2484_s14 }
 0x1e3   : > { %v1400_v16 = vpop.permute.xlu0 %1399  ;;  %v1406_v17 = vpop.permute.xlu1 %1405 }
 0x1e4   : > { %1444 = vst.msk [vmem:[#allocation3 + $0x20] sm:$0xff] %vm1439_vm10, %v1400_v16 }
 0x1e5   : > { %1574 = vst.msk [vmem:[#allocation3 + $0x20] sm:$0xff] %vm1569_vm11, %v1530_v51  ;;  %1801 = vrot.lane.b32.xlu0 %v1758_v18, %s2489_s23  ;;  %1030 = vrot.lane.b32.xlu1 %v1758_v18, %s2483_s13  ;;  %v1745_v51 = vld [vmem:[#allocation2 + $0x19a] sm:$0xff] }
 0x1e6   : > { %1703 = vst.msk [vmem:[#allocation3 + $0x20] sm:$0xff] %vm1698_vm12, %v1659_v54  ;;  %v1762_v55 = vpack.c.bf16 %v1746_v52, %v1745_v51 }
 0x1e7   : > { %1832 = vst.msk [vmem:[#allocation3 + $0x20] sm:$0xff] %vm1827_vm13, %v1788_v61  ;;  %v1534_v21 = vpop.permute.xlu0 %1533  ;;  %v892_v23 = vpop.permute.xlu1 %891 }
 0x1e8   : > { %932 = vst.msk [vmem:[#allocation3 + $0x40] sm:$0xff] %vm923_vm4, %v892_v23 }
 0x1e9   : > { %1157 = vrot.lane.b32.xlu0 %v2855_v10, %s2486_s20  ;;  %1163 = vrot.lane.b32.xlu1 %v1116_v35, %s2486_s20 }
 0x1eb   : > { %v1663_v26 = vpop.permute.xlu0 %1662  ;;  %v1532_v27 = vpop.permute.xlu1 %1531 }
 0x1ec   : > { %1575 = vst.msk [vmem:[#allocation3 + $0x28] sm:$0xff] %vm1569_vm11, %v1532_v27 }
 0x1ed   : > { %1286 = vrot.lane.b32.xlu0 %v1629_v22, %s2488_s22  ;;  %1292 = vrot.lane.b32.xlu1 %v1245_v25, %s2488_s22 }
 0x1ee   : > { %v1848_v24 = vld [vmem:[#allocation3 + $0x20] sm:$0xff] }
 0x1ef   : > { %2428 = vmatprep.mubr.msk.bf16.mxu1 %vm1880_vm14, %v1848_v24  ;;  %v1792_v29 = vpop.permute.xlu0 %1791  ;;  %v1661_v30 = vpop.permute.xlu1 %1660 }
 0x1f0   : > { %1704 = vst.msk [vmem:[#allocation3 + $0x28] sm:$0xff] %vm1698_vm12, %v1661_v30 }
 0x1f1   : > { %1415 = vrot.lane.b32.xlu0 %v1758_v18, %s2490_s25  ;;  %1421 = vrot.lane.b32.xlu1 %v1374_v31, %s2490_s25 }
 0x1f3   : > { %v1021_v10 = vpop.permute.xlu0 %1020  ;;  %v890_v32 = vpop.permute.xlu1 %889 }
 0x1f4   : > { %1061 = vst.msk [vmem:[#allocation3 + $0x40] sm:$0xff] %vm1052_vm6, %v1021_v10 }
 0x1f5   : > { %931 = vst.msk [vmem:[#allocation3 + $0x38] sm:$0xff] %vm923_vm4, %v890_v32  ;;  %1549 = vrot.lane.b32.xlu0 %v1116_v35, %s2485_s15  ;;  %1547 = vrot.lane.b32.xlu1 %v2891_v40, %s2485_s15 }
 0x1f7   : > { %v1790_v33 = vpop.permute.xlu0 %1789  ;;  %v1019_v42 = vpop.permute.xlu1 %1018 }
 0x1f8   : > { %1833 = vst.msk [vmem:[#allocation3 + $0x28] sm:$0xff] %vm1827_vm13, %v1790_v33 }
 0x1f9   : > { %1060 = vst.msk [vmem:[#allocation3 + $0x38] sm:$0xff] %vm1052_vm6, %v1019_v42  ;;  %1678 = vrot.lane.b32.xlu0 %v1245_v25, %s2487_s21  ;;  %1676 = vrot.lane.b32.xlu1 %v1631_v34, %s2487_s21 }
 0x1fa   : > { %1189 = vst.msk [vmem:[#allocation3 + $0x38] sm:$0xff] %vm1181_vm8, %v3009_v7 }
 0x1fb   : > { %1318 = vst.msk [vmem:[#allocation3 + $0x38] sm:$0xff] %vm1310_vm9, %v1277_v9  ;;  %v1146_v38 = vpop.permute.xlu0 %1145  ;;  %v1152_v41 = vpop.permute.xlu1 %1151 }
 0x1fc   : > { %1447 = vst.msk [vmem:[#allocation3 + $0x38] sm:$0xff] %vm1439_vm10, %v1406_v17 }
 0x1fd   : > { %1188 = vst.msk [vmem:[#allocation3 + $0x30] sm:$0xff] %vm1181_vm8, %v1146_v38  ;;  %1805 = vrot.lane.b32.xlu0 %v1760_v39, %s2489_s23  ;;  %905 = vrot.lane.b32.xlu1 %v1631_v34, %s2484_s14 }
 0x1ff   : > { %v1275_v45 = vpop.permute.xlu0 %1274  ;;  %v1281_v47 = vpop.permute.xlu1 %1280  ;;  %v1849_v49 = vld [vmem:[#allocation3 + $0x28] sm:$0xff] }
 0x200   : > { %1317 = vst.msk [vmem:[#allocation3 + $0x30] sm:$0xff] %vm1310_vm9, %v1275_v45  ;;  %2429 = vmatmul.mubr.msk.bf16.gmra.mrb[8].mxu1 %vm1880_vm14, %v1849_v49 }
 0x201   : > { %1161 = vrot.lane.b32.xlu0 %v2891_v40, %s2486_s20  ;;  %1034 = vrot.lane.b32.xlu1 %v1760_v39, %s2483_s13 }
 0x203   : > { %v1404_v53 = vpop.permute.xlu0 %1403  ;;  %v1410_v54 = vpop.permute.xlu1 %1409 }
 0x204   : > { %1446 = vst.msk [vmem:[#allocation3 + $0x30] sm:$0xff] %vm1439_vm10, %v1404_v53 }
 0x205   : > { %1576 = vst.msk [vmem:[#allocation3 + $0x30] sm:$0xff] %vm1569_vm11, %v1534_v21  ;;  %1290 = vrot.lane.b32.xlu0 %v1631_v34, %s2488_s22  ;;  %1680 = vrot.lane.b32.xlu1 %v1633_v50, %s2487_s21 }
 0x206   : > { %1705 = vst.msk [vmem:[#allocation3 + $0x30] sm:$0xff] %vm1698_vm12, %v1663_v26 }
 0x207   : > { %1834 = vst.msk [vmem:[#allocation3 + $0x30] sm:$0xff] %vm1827_vm13, %v1792_v29  ;;  %v1538_v40 = vpop.permute.xlu0 %1537  ;;  %v896_v56 = vpop.permute.xlu1 %895 }
 0x208   : > { %934 = vst.msk [vmem:[#allocation3 + $0x50] sm:$0xff] %vm923_vm4, %v896_v56 }
 0x209   : > { %1419 = vrot.lane.b32.xlu0 %v1760_v39, %s2490_s25  ;;  %1809 = vrot.lane.b32.xlu1 %v1762_v55, %s2489_s23 }
 0x20b   : > { %v1667_v57 = vpop.permute.xlu0 %1666  ;;  %v1536_v59 = vpop.permute.xlu1 %1535 }
 0x20c   : > { %1577 = vst.msk [vmem:[#allocation3 + $0x38] sm:$0xff] %vm1569_vm11, %v1536_v59 }
 0x20d   : > { %1807 = vrot.lane.b32.xlu0 %v1374_v31, %s2489_s23 }
 0x20e   : > { %v1850_v61 = vld [vmem:[#allocation3 + $0x30] sm:$0xff] }
 0x20f   : > { %2432 = vmatprep.mubr.msk.bf16.mxu1 %vm1880_vm14, %v1850_v61  ;;  %v1796_v46 = vpop.permute.xlu0 %1795  ;;  %v1665_v48 = vpop.permute.xlu1 %1664 }
 0x210   : > { %1706 = vst.msk [vmem:[#allocation3 + $0x38] sm:$0xff] %vm1698_vm12, %v1665_v48 }
 0x213   : > { %v1025_v62 = vpop.permute.xlu0 %1024  ;;  %v894_v2 = vpop.permute.xlu1 %893 }
 0x214   : > { %1063 = vst.msk [vmem:[#allocation3 + $0x50] sm:$0xff] %vm1052_vm6, %v1025_v62 }
 0x215   : > { %933 = vst.msk [vmem:[#allocation3 + $0x48] sm:$0xff] %vm923_vm4, %v894_v2 }
 0x217   : > { %v1794_v63 = vpop.permute.xlu0 %1793  ;;  %v1023_v3 = vpop.permute.xlu1 %1022 }
 0x218   : > { %1835 = vst.msk [vmem:[#allocation3 + $0x38] sm:$0xff] %vm1827_vm13, %v1794_v63  ;;  %v3149_v63 = vld [vmem:[%s3288_s6] ss:$0 sm:$0xff] }
 0x219   : > { %1062 = vst.msk [vmem:[#allocation3 + $0x48] sm:$0xff] %vm1052_vm6, %v1023_v3 }
 0x21a   : > { %1191 = vst.msk [vmem:[#allocation3 + $0x48] sm:$0xff] %vm1181_vm8, %v1152_v41 }
 0x21b   : > { %1320 = vst.msk [vmem:[#allocation3 + $0x48] sm:$0xff] %vm1310_vm9, %v1281_v47  ;;  %v1150_v4 = vpop.permute.xlu0 %1149  ;;  %v1156_v6 = vpop.permute.xlu1 %1155 }
 0x21c   : > { %1449 = vst.msk [vmem:[#allocation3 + $0x48] sm:$0xff] %vm1439_vm10, %v1410_v54 }
 0x21d   : > { %1190 = vst.msk [vmem:[#allocation3 + $0x40] sm:$0xff] %vm1181_vm8, %v1150_v4 }
 0x21f   : > { %v1279_v1 = vpop.permute.xlu0 %1278  ;;  %v1285_v7 = vpop.permute.xlu1 %1284  ;;  %v1851_v22 = vld [vmem:[#allocation3 + $0x38] sm:$0xff] }
 0x220   : > { %1319 = vst.msk [vmem:[#allocation3 + $0x40] sm:$0xff] %vm1310_vm9, %v1279_v1  ;;  %2433 = vmatmul.mubr.msk.bf16.gmra.mrb[12].mxu1 %vm1880_vm14, %v1851_v22 }
 0x223   : > { %v1408_v8 = vpop.permute.xlu0 %1407  ;;  %v1414_v9 = vpop.permute.xlu1 %1413 }
 0x224   : > { %1448 = vst.msk [vmem:[#allocation3 + $0x40] sm:$0xff] %vm1439_vm10, %v1408_v8 }
 0x225   : > { %1578 = vst.msk [vmem:[#allocation3 + $0x40] sm:$0xff] %vm1569_vm11, %v1538_v40 }
 0x226   : > { %1707 = vst.msk [vmem:[#allocation3 + $0x40] sm:$0xff] %vm1698_vm12, %v1667_v57 }
 0x227   : > { %1836 = vst.msk [vmem:[#allocation3 + $0x40] sm:$0xff] %vm1827_vm13, %v1796_v46  ;;  %v1542_v11 = vpop.permute.xlu0 %1541  ;;  %v900_v12 = vpop.permute.xlu1 %899 }
 0x228   : > { %936 = vst.msk [vmem:[#allocation3 + $0x60] sm:$0xff] %vm923_vm4, %v900_v12 }
 0x22b   : > { %v1671_v13 = vpop.permute.xlu0 %1670  ;;  %v1540_v14 = vpop.permute.xlu1 %1539 }
 0x22c   : > { %1579 = vst.msk [vmem:[#allocation3 + $0x48] sm:$0xff] %vm1569_vm11, %v1540_v14 }
 0x22e   : > { %v1852_v15 = vld [vmem:[#allocation3 + $0x40] sm:$0xff] }
 0x22f   : > { %2436 = vmatprep.mubr.msk.bf16.mxu1 %vm1880_vm14, %v1852_v15  ;;  %v1800_v16 = vpop.permute.xlu0 %1799  ;;  %v1669_v17 = vpop.permute.xlu1 %1668 }
 0x230   : > { %1708 = vst.msk [vmem:[#allocation3 + $0x48] sm:$0xff] %vm1698_vm12, %v1669_v17 }
 0x233   : > { %v1029_v18 = vpop.permute.xlu0 %1028  ;;  %v898_v35 = vpop.permute.xlu1 %897 }
 0x234   : > { %1065 = vst.msk [vmem:[#allocation3 + $0x60] sm:$0xff] %vm1052_vm6, %v1029_v18 }
 0x235   : > { %935 = vst.msk [vmem:[#allocation3 + $0x58] sm:$0xff] %vm923_vm4, %v898_v35 }
 0x237   : > { %v1798_v19 = vpop.permute.xlu0 %1797  ;;  %v1027_v20 = vpop.permute.xlu1 %1026 }
 0x238   : > { %1837 = vst.msk [vmem:[#allocation3 + $0x48] sm:$0xff] %vm1827_vm13, %v1798_v19 }
 0x239   : > { %1064 = vst.msk [vmem:[#allocation3 + $0x58] sm:$0xff] %vm1052_vm6, %v1027_v20 }
 0x23a   : > { %1193 = vst.msk [vmem:[#allocation3 + $0x58] sm:$0xff] %vm1181_vm8, %v1156_v6 }
 0x23b   : > { %1322 = vst.msk [vmem:[#allocation3 + $0x58] sm:$0xff] %vm1310_vm9, %v1285_v7  ;;  %v1154_v21 = vpop.permute.xlu0 %1153  ;;  %v1160_v23 = vpop.permute.xlu1 %1159 }
 0x23c   : > { %1451 = vst.msk [vmem:[#allocation3 + $0x58] sm:$0xff] %vm1439_vm10, %v1414_v9 }
 0x23d   : > { %1192 = vst.msk [vmem:[#allocation3 + $0x50] sm:$0xff] %vm1181_vm8, %v1154_v21 }
 0x23f   : > { %v1283_v25 = vpop.permute.xlu0 %1282  ;;  %v1289_v26 = vpop.permute.xlu1 %1288  ;;  %v1853_v27 = vld [vmem:[#allocation3 + $0x48] sm:$0xff] }
 0x240   : > { %1321 = vst.msk [vmem:[#allocation3 + $0x50] sm:$0xff] %vm1310_vm9, %v1283_v25  ;;  %2437 = vmatmul.mubr.msk.bf16.gmra.mrb[16].mxu1 %vm1880_vm14, %v1853_v27 }
 0x243   : > { %v1412_v28 = vpop.permute.xlu0 %1411  ;;  %v1418_v5 = vpop.permute.xlu1 %1417 }
 0x244   : > { %1450 = vst.msk [vmem:[#allocation3 + $0x50] sm:$0xff] %vm1439_vm10, %v1412_v28 }
 0x245   : > { %1580 = vst.msk [vmem:[#allocation3 + $0x50] sm:$0xff] %vm1569_vm11, %v1542_v11 }
 0x246   : > { %1709 = vst.msk [vmem:[#allocation3 + $0x50] sm:$0xff] %vm1698_vm12, %v1671_v13 }
 0x247   : > { %1838 = vst.msk [vmem:[#allocation3 + $0x50] sm:$0xff] %vm1827_vm13, %v1800_v16  ;;  %v1546_v24 = vpop.permute.xlu0 %1545  ;;  %v904_v29 = vpop.permute.xlu1 %903 }
 0x248   : > { %938 = vst.msk [vmem:[#allocation3 + $0x70] sm:$0xff] %vm923_vm4, %v904_v29 }
 0x24b   : > { %v1675_v30 = vpop.permute.xlu0 %1674  ;;  %v1544_v31 = vpop.permute.xlu1 %1543 }
 0x24c   : > { %1581 = vst.msk [vmem:[#allocation3 + $0x58] sm:$0xff] %vm1569_vm11, %v1544_v31 }
 0x24e   : > { %v1854_v10 = vld [vmem:[#allocation3 + $0x50] sm:$0xff] }
 0x24f   : > { %2440 = vmatprep.mubr.msk.bf16.mxu1 %vm1880_vm14, %v1854_v10  ;;  %v1804_v32 = vpop.permute.xlu0 %1803  ;;  %v1673_v60 = vpop.permute.xlu1 %1672 }
 0x250   : > { %1710 = vst.msk [vmem:[#allocation3 + $0x58] sm:$0xff] %vm1698_vm12, %v1673_v60 }
 0x253   : > { %v1033_v0 = vpop.permute.xlu0 %1032  ;;  %v902_v33 = vpop.permute.xlu1 %901 }
 0x254   : > { %1067 = vst.msk [vmem:[#allocation3 + $0x70] sm:$0xff] %vm1052_vm6, %v1033_v0 }
 0x255   : > { %937 = vst.msk [vmem:[#allocation3 + $0x68] sm:$0xff] %vm923_vm4, %v902_v33 }
 0x257   : > { %v1802_v42 = vpop.permute.xlu0 %1801  ;;  %v1031_v34 = vpop.permute.xlu1 %1030 }
 0x258   : > { %1839 = vst.msk [vmem:[#allocation3 + $0x58] sm:$0xff] %vm1827_vm13, %v1802_v42 }
 0x259   : > { %1066 = vst.msk [vmem:[#allocation3 + $0x68] sm:$0xff] %vm1052_vm6, %v1031_v34 }
 0x25a   : > { %1195 = vst.msk [vmem:[#allocation3 + $0x68] sm:$0xff] %vm1181_vm8, %v1160_v23 }
 0x25b   : > { %1324 = vst.msk [vmem:[#allocation3 + $0x68] sm:$0xff] %vm1310_vm9, %v1289_v26  ;;  %v1158_v36 = vpop.permute.xlu0 %1157  ;;  %v1164_v37 = vpop.permute.xlu1 %1163 }
 0x25c   : > { %1453 = vst.msk [vmem:[#allocation3 + $0x68] sm:$0xff] %vm1439_vm10, %v1418_v5 }
 0x25d   : > { %1194 = vst.msk [vmem:[#allocation3 + $0x60] sm:$0xff] %vm1181_vm8, %v1158_v36 }
 0x25f   : > { %v1287_v38 = vpop.permute.xlu0 %1286  ;;  %v1293_v41 = vpop.permute.xlu1 %1292  ;;  %v1855_v39 = vld [vmem:[#allocation3 + $0x58] sm:$0xff] }
 0x260   : > { %1323 = vst.msk [vmem:[#allocation3 + $0x60] sm:$0xff] %vm1310_vm9, %v1287_v38  ;;  %2441 = vmatmul.mubr.msk.bf16.gmra.mrb[20].mxu1 %vm1880_vm14, %v1855_v39 }
 0x263   : > { %v1416_v43 = vpop.permute.xlu0 %1415  ;;  %v1422_v44 = vpop.permute.xlu1 %1421 }
 0x264   : > { %1452 = vst.msk [vmem:[#allocation3 + $0x60] sm:$0xff] %vm1439_vm10, %v1416_v43 }
 0x265   : > { %1582 = vst.msk [vmem:[#allocation3 + $0x60] sm:$0xff] %vm1569_vm11, %v1546_v24 }
 0x266   : > { %1711 = vst.msk [vmem:[#allocation3 + $0x60] sm:$0xff] %vm1698_vm12, %v1675_v30 }
 0x267   : > { %1840 = vst.msk [vmem:[#allocation3 + $0x60] sm:$0xff] %vm1827_vm13, %v1804_v32  ;;  %v1550_v45 = vpop.permute.xlu0 %1549  ;;  %v1548_v47 = vpop.permute.xlu1 %1547 }
 0x268   : > { %1583 = vst.msk [vmem:[#allocation3 + $0x68] sm:$0xff] %vm1569_vm11, %v1548_v47 }
 0x26b   : > { %v1679_v49 = vpop.permute.xlu0 %1678  ;;  %v1677_v50 = vpop.permute.xlu1 %1676 }
 0x26c   : > { %1712 = vst.msk [vmem:[#allocation3 + $0x68] sm:$0xff] %vm1698_vm12, %v1677_v50 }
 0x26e   : > { %v1856_v51 = vld [vmem:[#allocation3 + $0x60] sm:$0xff] }
 0x26f   : > { %2444 = vmatprep.mubr.msk.bf16.mxu1 %vm1880_vm14, %v1856_v51  ;;  %v1806_v52 = vpop.permute.xlu0 %1805  ;;  %v906_v53 = vpop.permute.xlu1 %905 }
 0x270   : > { %1841 = vst.msk [vmem:[#allocation3 + $0x68] sm:$0xff] %vm1827_vm13, %v1806_v52 }
 0x271   : > { %939 = vst.msk [vmem:[#allocation3 + $0x78] sm:$0xff] %vm923_vm4, %v906_v53 }
 0x273   : > { %v1162_v54 = vpop.permute.xlu0 %1161  ;;  %v1035_v55 = vpop.permute.xlu1 %1034 }
 0x274   : > { %1196 = vst.msk [vmem:[#allocation3 + $0x70] sm:$0xff] %vm1181_vm8, %v1162_v54 }
 0x275   : > { %1068 = vst.msk [vmem:[#allocation3 + $0x78] sm:$0xff] %vm1052_vm6, %v1035_v55 }
 0x276   : > { %1197 = vst.msk [vmem:[#allocation3 + $0x78] sm:$0xff] %vm1181_vm8, %v1164_v37 }
 0x277   : > { %1326 = vst.msk [vmem:[#allocation3 + $0x78] sm:$0xff] %vm1310_vm9, %v1293_v41  ;;  %v1291_v40 = vpop.permute.xlu0 %1290  ;;  %v1857_v56 = vld [vmem:[#allocation3 + $0x68] sm:$0xff]  ;;  %v1681_v57 = vpop.permute.xlu1 %1680 }
 0x278   : > { %1455 = vst.msk [vmem:[#allocation3 + $0x78] sm:$0xff] %vm1439_vm10, %v1422_v44  ;;  %2445 = vmatmul.mubr.msk.bf16.gmra.mrb[24].mxu1 %vm1880_vm14, %v1857_v56 }
 0x279   : > { %1325 = vst.msk [vmem:[#allocation3 + $0x70] sm:$0xff] %vm1310_vm9, %v1291_v40 }
 0x27a   : > { %1585 = vst.msk [vmem:[#allocation3 + $0x78] sm:$0xff] %vm1569_vm11, %v2909_v58  ;;  %v3144_v58 = vld [vmem:[%s3287_s5] ss:$0 sm:$0xff] }
 0x27b   : > { %1714 = vst.msk [vmem:[#allocation3 + $0x78] sm:$0xff] %vm1698_vm12, %v1681_v57  ;;  %v1420_v59 = vpop.permute.xlu0 %1419  ;;  %v1810_v61 = vpop.permute.xlu1 %1809 }
 0x27c   : > { %1454 = vst.msk [vmem:[#allocation3 + $0x70] sm:$0xff] %vm1439_vm10, %v1420_v59 }
 0x27d   : > { %1843 = vst.msk [vmem:[#allocation3 + $0x78] sm:$0xff] %vm1827_vm13, %v1810_v61 }
 0x27e   : > { %1584 = vst.msk [vmem:[#allocation3 + $0x70] sm:$0xff] %vm1569_vm11, %v1550_v45 }
 0x27f   : > { %1713 = vst.msk [vmem:[#allocation3 + $0x70] sm:$0xff] %vm1698_vm12, %v1679_v49  ;;  %v1808_v46 = vpop.permute.xlu0 %1807 }
 0x280   : > { %1842 = vst.msk [vmem:[#allocation3 + $0x70] sm:$0xff] %vm1827_vm13, %v1808_v46 }
 0x284   : > { %v1859_v48 = vld [vmem:[#allocation3 + $0x78] sm:$0xff] }
 0x287   : > { %v1858_v62 = vld [vmem:[#allocation3 + $0x70] sm:$0xff] }
 0x288   : > { %2448 = vmatprep.mubr.msk.bf16.mxu1 %vm1880_vm14, %v1858_v62 }
 0x289   : > { %2449 = vmatmul.mubr.msk.bf16.gmra.mrb[28].mxu1 %vm1880_vm14, %v1859_v48 }
 0x293   : > { %v2422_v2 = vpop.f32.mrb[0].mxu1 }
 0x294   : > { %v2103_v3 = vmul.f32 %v2422_v2, %v3144_v58  ;;  %v1967_v4 = vpop.f32.mrb[1].mxu1 }
 0x295   : > { %v2101_v6 = vmul.f32 %v3144_v58, %v1967_v4  ;;  %v2423_v1 = vpop.f32.mrb[2].mxu1 }
 0x296   : > { %v2142_v7 = vadd.f32 %v3149_v63, %v2103_v3  ;;  %v2104_v22 = vmul.f32 %v2423_v1, %v3144_v58  ;;  %v1970_v8 = vpop.f32.mrb[3].mxu1 }
 0x297   : > { %v2140_v9 = vadd.f32 %v3149_v63, %v2101_v6  ;;  %v2102_v11 = vmul.f32 %v3144_v58, %v1970_v8 }
 0x298   : > { %v2174_v12 = vmax.f32 %v2142_v7, 0.0  ;;  %v2143_v13 = vadd.f32 %v3149_v63, %v2104_v22 }
 0x299   : > { %v2172_v14 = vmax.f32 %v2140_v9, 0.0  ;;  %v2141_v15 = vadd.f32 %v3149_v63, %v2102_v11 }
 0x29a   : > { %2206 = vst.msk [vmem:[%s2547_s10 + $0x10] sm:$0xff] %vm714_vm5, %v2174_v12  ;;  %v2175_v16 = vmax.f32 %v2143_v13, 0.0 }
 0x29b   : > { %2204 = vst.msk [vmem:[%s2547_s10] sm:$0xff] %vm714_vm5, %v2172_v14  ;;  %v2173_v17 = vmax.f32 %v2141_v15, 0.0 }
 0x29c   : > { %2207 = vst.msk [vmem:[%s2547_s10 + $0x18] sm:$0xff] %vm714_vm5, %v2175_v16 }
 0x29d   : > { %2205 = vst.msk [vmem:[%s2547_s10 + $0x8] sm:$0xff] %vm714_vm5, %v2173_v17 }
 0x2b3   : > { %v2426_v18 = vpop.f32.mrb[4].mxu1 }
 0x2b4   : > { %v2107_v35 = vmul.f32 %v2426_v18, %v3144_v58  ;;  %v1983_v19 = vpop.f32.mrb[5].mxu1 }
 0x2b5   : > { %v2105_v20 = vmul.f32 %v3144_v58, %v1983_v19  ;;  %v2427_v21 = vpop.f32.mrb[6].mxu1 }
 0x2b6   : > { %v2146_v23 = vadd.f32 %v3149_v63, %v2107_v35  ;;  %v2108_v25 = vmul.f32 %v2427_v21, %v3144_v58  ;;  %v1986_v26 = vpop.f32.mrb[7].mxu1 }
 0x2b7   : > { %v2144_v27 = vadd.f32 %v3149_v63, %v2105_v20  ;;  %v2106_v28 = vmul.f32 %v3144_v58, %v1986_v26 }
 0x2b8   : > { %v2178_v5 = vmax.f32 %v2146_v23, 0.0  ;;  %v2147_v24 = vadd.f32 %v3149_v63, %v2108_v25 }
 0x2b9   : > { %v2176_v29 = vmax.f32 %v2144_v27, 0.0  ;;  %v2145_v30 = vadd.f32 %v3149_v63, %v2106_v28 }
 0x2ba   : > { %2210 = vst.msk [vmem:[%s2547_s10 + $0x30] sm:$0xff] %vm714_vm5, %v2178_v5  ;;  %v2179_v31 = vmax.f32 %v2147_v24, 0.0 }
 0x2bb   : > { %2208 = vst.msk [vmem:[%s2547_s10 + $0x20] sm:$0xff] %vm714_vm5, %v2176_v29  ;;  %v2177_v10 = vmax.f32 %v2145_v30, 0.0 }
 0x2bc   : > { %2211 = vst.msk [vmem:[%s2547_s10 + $0x38] sm:$0xff] %vm714_vm5, %v2179_v31 }
 0x2bd   : > { %2209 = vst.msk [vmem:[%s2547_s10 + $0x28] sm:$0xff] %vm714_vm5, %v2177_v10 }
 0x2d3   : > { %v2430_v32 = vpop.f32.mrb[8].mxu1 }
 0x2d4   : > { %v2111_v60 = vmul.f32 %v2430_v32, %v3144_v58  ;;  %v1999_v0 = vpop.f32.mrb[9].mxu1 }
 0x2d5   : > { %v2109_v33 = vmul.f32 %v3144_v58, %v1999_v0  ;;  %v2431_v42 = vpop.f32.mrb[10].mxu1 }
 0x2d6   : > { %v2150_v34 = vadd.f32 %v3149_v63, %v2111_v60  ;;  %v2112_v36 = vmul.f32 %v2431_v42, %v3144_v58  ;;  %v2002_v37 = vpop.f32.mrb[11].mxu1 }
 0x2d7   : > { %v2148_v38 = vadd.f32 %v3149_v63, %v2109_v33  ;;  %v2110_v41 = vmul.f32 %v3144_v58, %v2002_v37 }
 0x2d8   : > { %v2182_v39 = vmax.f32 %v2150_v34, 0.0  ;;  %v2151_v43 = vadd.f32 %v3149_v63, %v2112_v36 }
 0x2d9   : > { %v2180_v44 = vmax.f32 %v2148_v38, 0.0  ;;  %v2149_v45 = vadd.f32 %v3149_v63, %v2110_v41 }
 0x2da   : > { %2214 = vst.msk [vmem:[%s2547_s10 + $0x50] sm:$0xff] %vm714_vm5, %v2182_v39  ;;  %v2183_v47 = vmax.f32 %v2151_v43, 0.0 }
 0x2db   : > { %2212 = vst.msk [vmem:[%s2547_s10 + $0x40] sm:$0xff] %vm714_vm5, %v2180_v44  ;;  %v2181_v49 = vmax.f32 %v2149_v45, 0.0 }
 0x2dc   : > { %2215 = vst.msk [vmem:[%s2547_s10 + $0x58] sm:$0xff] %vm714_vm5, %v2183_v47 }
 0x2dd   : > { %2213 = vst.msk [vmem:[%s2547_s10 + $0x48] sm:$0xff] %vm714_vm5, %v2181_v49 }
 0x2f3   : > { %v2434_v50 = vpop.f32.mrb[12].mxu1 }
 0x2f4   : > { %v2115_v51 = vmul.f32 %v2434_v50, %v3144_v58  ;;  %v2015_v52 = vpop.f32.mrb[13].mxu1 }
 0x2f5   : > { %v2113_v53 = vmul.f32 %v3144_v58, %v2015_v52  ;;  %v2435_v54 = vpop.f32.mrb[14].mxu1 }
 0x2f6   : > { %v2154_v55 = vadd.f32 %v3149_v63, %v2115_v51  ;;  %v2116_v40 = vmul.f32 %v2435_v54, %v3144_v58  ;;  %v2018_v56 = vpop.f32.mrb[15].mxu1 }
 0x2f7   : > { %v2152_v57 = vadd.f32 %v3149_v63, %v2113_v53  ;;  %v2114_v59 = vmul.f32 %v3144_v58, %v2018_v56 }
 0x2f8   : > { %v2186_v61 = vmax.f32 %v2154_v55, 0.0  ;;  %v2155_v46 = vadd.f32 %v3149_v63, %v2116_v40 }
 0x2f9   : > { %v2184_v48 = vmax.f32 %v2152_v57, 0.0  ;;  %v2153_v62 = vadd.f32 %v3149_v63, %v2114_v59 }
 0x2fa   : > { %2218 = vst.msk [vmem:[%s2547_s10 + $0x70] sm:$0xff] %vm714_vm5, %v2186_v61  ;;  %v2187_v2 = vmax.f32 %v2155_v46, 0.0 }
 0x2fb   : > { %2216 = vst.msk [vmem:[%s2547_s10 + $0x60] sm:$0xff] %vm714_vm5, %v2184_v48  ;;  %v2185_v3 = vmax.f32 %v2153_v62, 0.0 }
 0x2fc   : > { %2219 = vst.msk [vmem:[%s2547_s10 + $0x78] sm:$0xff] %vm714_vm5, %v2187_v2 }
 0x2fd   : > { %2217 = vst.msk [vmem:[%s2547_s10 + $0x68] sm:$0xff] %vm714_vm5, %v2185_v3 }
 0x313   : > { %v2438_v4 = vpop.f32.mrb[16].mxu1 }
 0x314   : > { %v2119_v6 = vmul.f32 %v2438_v4, %v3144_v58  ;;  %v2031_v1 = vpop.f32.mrb[17].mxu1 }
 0x315   : > { %v2117_v7 = vmul.f32 %v3144_v58, %v2031_v1  ;;  %v2439_v22 = vpop.f32.mrb[18].mxu1 }
 0x316   : > { %v2158_v8 = vadd.f32 %v3149_v63, %v2119_v6  ;;  %v2120_v9 = vmul.f32 %v2439_v22, %v3144_v58  ;;  %v2034_v11 = vpop.f32.mrb[19].mxu1 }
 0x317   : > { %v2156_v12 = vadd.f32 %v3149_v63, %v2117_v7  ;;  %v2118_v13 = vmul.f32 %v3144_v58, %v2034_v11 }
 0x318   : > { %v2190_v14 = vmax.f32 %v2158_v8, 0.0  ;;  %v2159_v15 = vadd.f32 %v3149_v63, %v2120_v9 }
 0x319   : > { %v2188_v16 = vmax.f32 %v2156_v12, 0.0  ;;  %v2157_v17 = vadd.f32 %v3149_v63, %v2118_v13 }
 0x31a   : > { %2222 = vst.msk [vmem:[%s2547_s10 + $0x90] sm:$0xff] %vm714_vm5, %v2190_v14  ;;  %v2191_v18 = vmax.f32 %v2159_v15, 0.0 }
 0x31b   : > { %2220 = vst.msk [vmem:[%s2547_s10 + $0x80] sm:$0xff] %vm714_vm5, %v2188_v16  ;;  %v2189_v35 = vmax.f32 %v2157_v17, 0.0 }
 0x31c   : > { %2223 = vst.msk [vmem:[%s2547_s10 + $0x98] sm:$0xff] %vm714_vm5, %v2191_v18 }
 0x31d   : > { %2221 = vst.msk [vmem:[%s2547_s10 + $0x88] sm:$0xff] %vm714_vm5, %v2189_v35 }
 0x333   : > { %v2442_v19 = vpop.f32.mrb[20].mxu1 }
 0x334   : > { %v2123_v20 = vmul.f32 %v2442_v19, %v3144_v58  ;;  %v2047_v21 = vpop.f32.mrb[21].mxu1 }
 0x335   : > { %v2121_v23 = vmul.f32 %v3144_v58, %v2047_v21  ;;  %v2443_v25 = vpop.f32.mrb[22].mxu1 }
 0x336   : > { %v2162_v26 = vadd.f32 %v3149_v63, %v2123_v20  ;;  %v2124_v27 = vmul.f32 %v2443_v25, %v3144_v58  ;;  %v2050_v28 = vpop.f32.mrb[23].mxu1 }
 0x337   : > { %v2160_v5 = vadd.f32 %v3149_v63, %v2121_v23  ;;  %v2122_v24 = vmul.f32 %v3144_v58, %v2050_v28 }
 0x338   : > { %v2194_v29 = vmax.f32 %v2162_v26, 0.0  ;;  %v2163_v30 = vadd.f32 %v3149_v63, %v2124_v27 }
 0x339   : > { %v2192_v31 = vmax.f32 %v2160_v5, 0.0  ;;  %v2161_v10 = vadd.f32 %v3149_v63, %v2122_v24 }
 0x33a   : > { %2226 = vst.msk [vmem:[%s2547_s10 + $0xb0] sm:$0xff] %vm714_vm5, %v2194_v29  ;;  %v2195_v32 = vmax.f32 %v2163_v30, 0.0 }
 0x33b   : > { %2224 = vst.msk [vmem:[%s2547_s10 + $0xa0] sm:$0xff] %vm714_vm5, %v2192_v31  ;;  %v2193_v60 = vmax.f32 %v2161_v10, 0.0 }
 0x33c   : > { %2227 = vst.msk [vmem:[%s2547_s10 + $0xb8] sm:$0xff] %vm714_vm5, %v2195_v32 }
 0x33d   : > { %2225 = vst.msk [vmem:[%s2547_s10 + $0xa8] sm:$0xff] %vm714_vm5, %v2193_v60 }
 0x34b   : > { %v2446_v0 = vpop.f32.mrb[24].mxu1 }
 0x34c   : > { %v2127_v33 = vmul.f32 %v2446_v0, %v3144_v58  ;;  %v2063_v42 = vpop.f32.mrb[25].mxu1 }
 0x34d   : > { %v2125_v34 = vmul.f32 %v3144_v58, %v2063_v42  ;;  %v2447_v36 = vpop.f32.mrb[26].mxu1 }
 0x34e   : > { %v2166_v37 = vadd.f32 %v3149_v63, %v2127_v33  ;;  %v2128_v38 = vmul.f32 %v2447_v36, %v3144_v58  ;;  %v2066_v41 = vpop.f32.mrb[27].mxu1 }
 0x34f   : > { %v2164_v39 = vadd.f32 %v3149_v63, %v2125_v34  ;;  %v2126_v43 = vmul.f32 %v3144_v58, %v2066_v41 }
 0x350   : > { %v2198_v44 = vmax.f32 %v2166_v37, 0.0  ;;  %v2167_v45 = vadd.f32 %v3149_v63, %v2128_v38 }
 0x351   : > { %v2196_v47 = vmax.f32 %v2164_v39, 0.0  ;;  %v2165_v49 = vadd.f32 %v3149_v63, %v2126_v43 }
 0x352   : > { %2230 = vst.msk [vmem:[%s2547_s10 + $0xd0] sm:$0xff] %vm714_vm5, %v2198_v44  ;;  %v2199_v50 = vmax.f32 %v2167_v45, 0.0 }
 0x353   : > { %2228 = vst.msk [vmem:[%s2547_s10 + $0xc0] sm:$0xff] %vm714_vm5, %v2196_v47  ;;  %v2197_v51 = vmax.f32 %v2165_v49, 0.0 }
 0x354   : > { %2231 = vst.msk [vmem:[%s2547_s10 + $0xd8] sm:$0xff] %vm714_vm5, %v2199_v50 }
 0x355   : > { %2229 = vst.msk [vmem:[%s2547_s10 + $0xc8] sm:$0xff] %vm714_vm5, %v2197_v51 }
 0x35c   : > { %v2450_v52 = vpop.f32.mrb[28].mxu1 }
 0x35d   : > { %v2131_v53 = vmul.f32 %v2450_v52, %v3144_v58  ;;  %v2079_v54 = vpop.f32.mrb[29].mxu1 }
 0x35e   : > { %v2129_v55 = vmul.f32 %v3144_v58, %v2079_v54  ;;  %v2451_v40 = vpop.f32.mrb[30].mxu1 }
 0x35f   : > { %v2170_v56 = vadd.f32 %v3149_v63, %v2131_v53  ;;  %v2132_v57 = vmul.f32 %v2451_v40, %v3144_v58  ;;  %v2082_v59 = vpop.f32.mrb[31].mxu1 }
 0x360   : > { %v2168_v61 = vadd.f32 %v3149_v63, %v2129_v55  ;;  %v2130_v46 = vmul.f32 %v3144_v58, %v2082_v59 }
 0x361   : > { %v2202_v48 = vmax.f32 %v2170_v56, 0.0  ;;  %v2171_v62 = vadd.f32 %v3149_v63, %v2132_v57 }
 0x362   : > { %v2200_v2 = vmax.f32 %v2168_v61, 0.0  ;;  %v2169_v3 = vadd.f32 %v3149_v63, %v2130_v46 }
 0x363   : > { %2234 = vst.msk [vmem:[%s2547_s10 + $0xf0] sm:$0xff] %vm714_vm5, %v2202_v48  ;;  %v2203_v4 = vmax.f32 %v2171_v62, 0.0 }
 0x364   : > { %2232 = vst.msk [vmem:[%s2547_s10 + $0xe0] sm:$0xff] %vm714_vm5, %v2200_v2  ;;  %v2201_v6 = vmax.f32 %v2169_v3, 0.0 }
 0x365   : > { %2235 = vst.msk [vmem:[%s2547_s10 + $0xf8] sm:$0xff] %vm714_vm5, %v2203_v4 }
 0x366   : > { %2233 = vst.msk [vmem:[%s2547_s10 + $0xe8] sm:$0xff] %vm714_vm5, %v2201_v6 }
 0x367 PF: > { %s17_s24 = sadd.s32 1, %s2480_s24  }
 0x368   : > { %p14_p5 = scmp.ge.s32.totalorder %s17_s24, 4  }
 0x36a   :  { %16 = sbr.rel (!%p14_p5) target bundleno = 1 (0x1), region = 84 }

</bundles_post_ra>
